<compile_context>
chip_gen: v7x
topology: tpu7x:2x2x1
jax: 0.10.0
libtpu: 0.0.40
codegen_flags: <defaults>
</compile_context>

<pallas_src>
import jax
import jax.numpy as jnp
from jax import lax
from jax.experimental import pallas as pl
from jax.experimental.pallas import tpu as pltpu

LATENT = 128
IN_DIR = 42
D_IN = LATENT + IN_DIR   # 170
W_HID = 256

MAX_TILE = 2048          # ~10-12 MB VMEM live at this tile; fits all chips.


def _mlp_kernel(x_ref,
                w0_ref, b0_ref,
                w1_ref, b1_ref,
                w2_ref, b2_ref,
                w3_ref, b3_ref,
                w4_ref, b4_ref,
                o_ref):
    """One row-tile of the implicit_mask MLP, fully resident in VMEM."""
    x = x_ref[...]                                             # [tm, D_IN] bf16

    h = jnp.dot(x, w0_ref[...], preferred_element_type=jnp.float32) + b0_ref[...]
    h = jnp.maximum(h, 0.0)                                    # ReLU (f32)

    h = jnp.dot(h.astype(jnp.bfloat16), w1_ref[...],
                preferred_element_type=jnp.float32) + b1_ref[...]
    h = jnp.maximum(h, 0.0)

    h = jnp.dot(h.astype(jnp.bfloat16), w2_ref[...],
                preferred_element_type=jnp.float32) + b2_ref[...]
    h = jnp.maximum(h, 0.0)

    h = jnp.dot(h.astype(jnp.bfloat16), w3_ref[...],
                preferred_element_type=jnp.float32) + b3_ref[...]
    h = jnp.maximum(h, 0.0)                                    # [tm, W_HID]

    # Final layer (W_HID -> 1) as an NT matmul: [1, W_HID] x [tm, W_HID]^T
    # -> [1, tm], i.e. the lane-dense output row (no degenerate last dim).
    # (Equivalent to pl.dot(w4, h, trans_b=True); ~0.1% of FLOPs.)
    yt = lax.dot_general(
        w4_ref[...], h.astype(jnp.bfloat16),
        dimension_numbers=(((1,), (1,)), ((), ())),
        preferred_element_type=jnp.float32)                    # [1, tm]
    yt = yt + b4_ref[...]                                      # b4: [1, 1]

    o_ref[...] = jax.nn.sigmoid(yt).astype(o_ref.dtype)[None]  # [1, 1, tm]


def _full_spec(a):
    """Whole-array block, constant index map (weights/biases stay resident)."""
    zeros = (0,) * a.ndim
    return pl.BlockSpec(a.shape, lambda i: zeros)


def _pick_tile(n):
    """Row tile: large tiles for big N; single tile (no grid split) for small N.

    v5e/v6e have one TensorCore, so splitting small N across grid steps only
    adds per-step overhead and shrinks the lane-dense output row.  For large N
    the grid is naturally >= 2, which also lets v7x's two TCs share the work.
    """
    if n >= MAX_TILE:
        return MAX_TILE
    # One tile covering all rows, rounded up to a sublane multiple; keep the
    # output lane dim >= 128 whenever N >= 128 (unmasked vst).
    return max(8, ((n + 7) // 8) * 8)


def implicit_mask_forward(x, params, *, tm=None):
    """x: [N, D_IN] float; params: dict of f32 weights/biases. Returns [N, 1] f32."""
    N, d_in = x.shape
    assert d_in == D_IN

    if tm is None:
        tm = _pick_tile(N)
    assert tm % 8 == 0, "row tile must be a multiple of 8"

    n_tiles = pl.cdiv(N, tm)
    n_pad = n_tiles * tm

    # x stream in bf16: halves the dominant HBM traffic and removes the
    # per-step f32->bf16 convert inside the kernel.
    x = x.astype(jnp.bfloat16)
    # NOTE: no jnp.pad — if N % tm != 0 the last input block is a Pallas
    # boundary (partial) block; the extra rows compute garbage that is sliced
    # off below.  The output slab is exactly (n_tiles, 1, tm) so all stores
    # are in-bounds and lane-dense.

    # Weights go into the MXU in bf16; biases stay f32.
    w0 = params["w0"].astype(jnp.bfloat16)
    w1 = params["w1"].astype(jnp.bfloat16)
    w2 = params["w2"].astype(jnp.bfloat16)
    w3 = params["w3"].astype(jnp.bfloat16)
    w4 = params["w4"].reshape(1, W_HID).astype(jnp.bfloat16)   # (W_HID,1) -> (1,W_HID)
    b0, b1, b2, b3 = params["b0"], params["b1"], params["b2"], params["b3"]
    b4 = params["b4"]                                           # (1, 1)

    grid_spec = pltpu.PrefetchScalarGridSpec(
        num_scalar_prefetch=0,
        grid=(n_tiles,),
        in_specs=[
            pl.BlockSpec((tm, D_IN), lambda i: (i, 0)),   # x row tile (bf16)
            _full_spec(w0), _full_spec(b0),
            _full_spec(w1), _full_spec(b1),
            _full_spec(w2), _full_spec(b2),
            _full_spec(w3), _full_spec(b3),
            _full_spec(w4), _full_spec(b4),
        ],
        # Lane-dense output: one [1, tm] row per grid step.
        out_specs=pl.BlockSpec((1, 1, tm), lambda i: (i, 0, 0)),
    )

    out = pl.pallas_call(
        _mlp_kernel,
        out_shape=jax.ShapeDtypeStruct((n_tiles, 1, tm), jnp.float32),
        grid_spec=grid_spec,
        compiler_params=pltpu.CompilerParams(
            # Row tiles are independent; on v7x, if xprof shows one TC idle,
            # switch this axis to pltpu.CORE_PARALLEL to shard it across TCs.
            dimension_semantics=("parallel",),
            # Explicit headroom so large tiles don't trip v5e's 16 MiB
            # default scoped-VMEM limit (actual use ~10-12 MB at tm=2048).
            vmem_limit_bytes=48 * 1024 * 1024,
        ),
    )(x, w0, b0, w1, b1, w2, b2, w3, b3, w4, b4)

    return out.reshape(n_pad, 1)[:N]


def init_params(key):
    """Deterministic synthetic init mimicking nn.Linear default (uniform +/- 1/sqrt(fan_in))."""
    dims = [(D_IN, W_HID), (W_HID, W_HID), (W_HID, W_HID), (W_HID, W_HID), (W_HID, 1)]
    params = {}
    for idx, (fin, fout) in enumerate(dims):
        key, kw, kb = jax.random.split(key, 3)
        bound = 1.0 / jnp.sqrt(fin)
        # stored as [fan_in, fan_out] (pre-transposed vs. PyTorch's [out, in])
        params[f"w{idx}"] = jax.random.uniform(
            kw, (fin, fout), jnp.float32, -bound, bound)
        params[f"b{idx}"] = jax.random.uniform(
            kb, (1, fout), jnp.float32, -bound, bound)
    return params


def reference_forward(x, params):
    h = x
    for idx in range(4):
        h = jnp.maximum(h @ params[f"w{idx}"] + params[f"b{idx}"], 0.0)
    return jax.nn.sigmoid(h @ params["w4"] + params["b4"])


if __name__ == "__main__":
    key = jax.random.PRNGKey(0)
    key, kx = jax.random.split(key)

    N = 128                                   # number of sample points (rows)
    x = jax.random.normal(kx, (N, D_IN), jnp.float32)

    params = init_params(key)

    out = implicit_mask_forward(x, params)    # tm=128 -> single tile, lane-dense store
    out = jax.block_until_ready(out)

    ref = reference_forward(x, params)        # f32 reference
    assert out.shape == (N, 1)
    err = float(jnp.max(jnp.abs(out - ref)))
    # bf16 matmul operands (f32 accumulation) vs f32 reference -> loose tolerance.
    assert err < 2e-2, f"mismatch vs reference: max abs err {err}"

    print("KERNEL_OK")
</pallas_src>

<mosaic_0001>
module attributes {stable_mosaic.version = 11 : i64} {
  func.func @_mlp_kernel(%arg0: i32, %arg1: memref<128x170xbf16, #tpu.memory_space<vmem>>, %arg2: memref<170x256xbf16, #tpu.memory_space<vmem>>, %arg3: memref<1x256xf32, #tpu.memory_space<vmem>>, %arg4: memref<256x256xbf16, #tpu.memory_space<vmem>>, %arg5: memref<1x256xf32, #tpu.memory_space<vmem>>, %arg6: memref<256x256xbf16, #tpu.memory_space<vmem>>, %arg7: memref<1x256xf32, #tpu.memory_space<vmem>>, %arg8: memref<256x256xbf16, #tpu.memory_space<vmem>>, %arg9: memref<1x256xf32, #tpu.memory_space<vmem>>, %arg10: memref<1x256xbf16, #tpu.memory_space<vmem>>, %arg11: memref<1x1xf32, #tpu.memory_space<vmem>>, %arg12: memref<1x1x128xf32, #tpu.memory_space<vmem>>) attributes {dimension_semantics = [#tpu.dimension_semantics<parallel>], iteration_bounds = array<i64: 1>, scalar_prefetch = 0 : i64, scratch_operands = 0 : i64, tpu.core_type = #tpu.core_type<tc>, window_params = [{transform_indices = @transform_0, window_bounds = array<i64: 128, 170>}, {pipeline_mode = #tpu.pipeline_mode<synchronous>, transform_indices = @transform_1, window_bounds = array<i64: 170, 256>}, {pipeline_mode = #tpu.pipeline_mode<synchronous>, transform_indices = @transform_2, window_bounds = array<i64: 1, 256>}, {pipeline_mode = #tpu.pipeline_mode<synchronous>, transform_indices = @transform_3, window_bounds = array<i64: 256, 256>}, {pipeline_mode = #tpu.pipeline_mode<synchronous>, transform_indices = @transform_4, window_bounds = array<i64: 1, 256>}, {pipeline_mode = #tpu.pipeline_mode<synchronous>, transform_indices = @transform_5, window_bounds = array<i64: 256, 256>}, {pipeline_mode = #tpu.pipeline_mode<synchronous>, transform_indices = @transform_6, window_bounds = array<i64: 1, 256>}, {pipeline_mode = #tpu.pipeline_mode<synchronous>, transform_indices = @transform_7, window_bounds = array<i64: 256, 256>}, {pipeline_mode = #tpu.pipeline_mode<synchronous>, transform_indices = @transform_8, window_bounds = array<i64: 1, 256>}, {pipeline_mode = #tpu.pipeline_mode<synchronous>, transform_indices = @transform_9, window_bounds = array<i64: 1, 256>}, {pipeline_mode = #tpu.pipeline_mode<synchronous>, transform_indices = @transform_10, window_bounds = array<i64: 1, 1>}, {transform_indices = @transform_11, window_bounds = array<i64: 1, 1, 128>}]} {
    %c0 = arith.constant 0 : index
    %c0_0 = arith.constant 0 : index
    %0 = vector.load %arg1[%c0, %c0_0] : memref<128x170xbf16, #tpu.memory_space<vmem>>, vector<128x170xbf16>
    %c0_1 = arith.constant 0 : index
    %c0_2 = arith.constant 0 : index
    %1 = vector.load %arg2[%c0_1, %c0_2] : memref<170x256xbf16, #tpu.memory_space<vmem>>, vector<170x256xbf16>
    %cst = arith.constant dense<0.000000e+00> : vector<128x256xf32>
    %2 = tpu.matmul %0, %1, %cst {dimension_numbers = #tpu.dot_dimension_numbers<[1], [0], [0], [1], [0, 0, 1, 1], [], []>} : vector<128x170xbf16>, vector<170x256xbf16>, vector<128x256xf32> -> vector<128x256xf32>
    %c0_3 = arith.constant 0 : index
    %c0_4 = arith.constant 0 : index
    %3 = vector.load %arg3[%c0_3, %c0_4] : memref<1x256xf32, #tpu.memory_space<vmem>>, vector<1x256xf32>
    %4 = vector.broadcast %3 : vector<1x256xf32> to vector<128x256xf32>
    %5 = arith.addf %2, %4 : vector<128x256xf32>
    %cst_5 = arith.constant 0.000000e+00 : f32
    %6 = vector.broadcast %cst_5 : f32 to vector<128x256xf32>
    %7 = arith.maximumf %5, %6 : vector<128x256xf32>
    %8 = arith.truncf %7 : vector<128x256xf32> to vector<128x256xbf16>
    %c0_6 = arith.constant 0 : index
    %c0_7 = arith.constant 0 : index
    %9 = vector.load %arg4[%c0_6, %c0_7] : memref<256x256xbf16, #tpu.memory_space<vmem>>, vector<256x256xbf16>
    %cst_8 = arith.constant dense<0.000000e+00> : vector<128x256xf32>
    %10 = tpu.matmul %8, %9, %cst_8 {dimension_numbers = #tpu.dot_dimension_numbers<[1], [0], [0], [1], [0, 0, 1, 1], [], []>} : vector<128x256xbf16>, vector<256x256xbf16>, vector<128x256xf32> -> vector<128x256xf32>
    %c0_9 = arith.constant 0 : index
    %c0_10 = arith.constant 0 : index
    %11 = vector.load %arg5[%c0_9, %c0_10] : memref<1x256xf32, #tpu.memory_space<vmem>>, vector<1x256xf32>
    %12 = vector.broadcast %11 : vector<1x256xf32> to vector<128x256xf32>
    %13 = arith.addf %10, %12 : vector<128x256xf32>
    %cst_11 = arith.constant 0.000000e+00 : f32
    %14 = vector.broadcast %cst_11 : f32 to vector<128x256xf32>
    %15 = arith.maximumf %13, %14 : vector<128x256xf32>
    %16 = arith.truncf %15 : vector<128x256xf32> to vector<128x256xbf16>
    %c0_12 = arith.constant 0 : index
    %c0_13 = arith.constant 0 : index
    %17 = vector.load %arg6[%c0_12, %c0_13] : memref<256x256xbf16, #tpu.memory_space<vmem>>, vector<256x256xbf16>
    %cst_14 = arith.constant dense<0.000000e+00> : vector<128x256xf32>
    %18 = tpu.matmul %16, %17, %cst_14 {dimension_numbers = #tpu.dot_dimension_numbers<[1], [0], [0], [1], [0, 0, 1, 1], [], []>} : vector<128x256xbf16>, vector<256x256xbf16>, vector<128x256xf32> -> vector<128x256xf32>
    %c0_15 = arith.constant 0 : index
    %c0_16 = arith.constant 0 : index
    %19 = vector.load %arg7[%c0_15, %c0_16] : memref<1x256xf32, #tpu.memory_space<vmem>>, vector<1x256xf32>
    %20 = vector.broadcast %19 : vector<1x256xf32> to vector<128x256xf32>
    %21 = arith.addf %18, %20 : vector<128x256xf32>
    %cst_17 = arith.constant 0.000000e+00 : f32
    %22 = vector.broadcast %cst_17 : f32 to vector<128x256xf32>
    %23 = arith.maximumf %21, %22 : vector<128x256xf32>
    %24 = arith.truncf %23 : vector<128x256xf32> to vector<128x256xbf16>
    %c0_18 = arith.constant 0 : index
    %c0_19 = arith.constant 0 : index
    %25 = vector.load %arg8[%c0_18, %c0_19] : memref<256x256xbf16, #tpu.memory_space<vmem>>, vector<256x256xbf16>
    %cst_20 = arith.constant dense<0.000000e+00> : vector<128x256xf32>
    %26 = tpu.matmul %24, %25, %cst_20 {dimension_numbers = #tpu.dot_dimension_numbers<[1], [0], [0], [1], [0, 0, 1, 1], [], []>} : vector<128x256xbf16>, vector<256x256xbf16>, vector<128x256xf32> -> vector<128x256xf32>
    %c0_21 = arith.constant 0 : index
    %c0_22 = arith.constant 0 : index
    %27 = vector.load %arg9[%c0_21, %c0_22] : memref<1x256xf32, #tpu.memory_space<vmem>>, vector<1x256xf32>
    %28 = vector.broadcast %27 : vector<1x256xf32> to vector<128x256xf32>
    %29 = arith.addf %26, %28 : vector<128x256xf32>
    %cst_23 = arith.constant 0.000000e+00 : f32
    %30 = vector.broadcast %cst_23 : f32 to vector<128x256xf32>
    %31 = arith.maximumf %29, %30 : vector<128x256xf32>
    %c0_24 = arith.constant 0 : index
    %c0_25 = arith.constant 0 : index
    %32 = vector.load %arg10[%c0_24, %c0_25] : memref<1x256xbf16, #tpu.memory_space<vmem>>, vector<1x256xbf16>
    %33 = arith.truncf %31 : vector<128x256xf32> to vector<128x256xbf16>
    %cst_26 = arith.constant dense<0.000000e+00> : vector<1x128xf32>
    %34 = tpu.matmul %32, %33, %cst_26 {dimension_numbers = #tpu.dot_dimension_numbers<[1], [1], [0], [0], [0, 0, 1, 0], [], []>} : vector<1x256xbf16>, vector<128x256xbf16>, vector<1x128xf32> -> vector<1x128xf32>
    %c0_27 = arith.constant 0 : index
    %c0_28 = arith.constant 0 : index
    %35 = vector.load %arg11[%c0_27, %c0_28] : memref<1x1xf32, #tpu.memory_space<vmem>>, vector<1x1xf32>
    %36 = vector.broadcast %35 : vector<1x1xf32> to vector<1x128xf32>
    %37 = arith.addf %34, %36 : vector<1x128xf32>
    %38 = arith.negf %37 : vector<1x128xf32>
    %39 = math.exp %38 : vector<1x128xf32>
    %cst_29 = arith.constant 1.000000e+00 : f32
    %40 = vector.broadcast %cst_29 : f32 to vector<1x128xf32>
    %41 = arith.addf %40, %39 : vector<1x128xf32>
    %42 = arith.divf %40, %41 : vector<1x128xf32>
    %43 = vector.shape_cast %42 : vector<1x128xf32> to vector<1x1x128xf32>
    %c0_30 = arith.constant 0 : index
    %c0_31 = arith.constant 0 : index
    %c0_32 = arith.constant 0 : index
    %44 = vector.load %arg12[%c0_30, %c0_31, %c0_32] : memref<1x1x128xf32, #tpu.memory_space<vmem>>, vector<1x1x128xf32>
    tpu.vector_store %arg12[%c0_30, %c0_31, %c0_32], %43 {strides = array<i32>} : memref<1x1x128xf32, #tpu.memory_space<vmem>>, vector<1x1x128xf32>,
    return
  }
  func.func @transform_0(%arg0: i32) -> (i32, i32) {
    %c0_i32 = arith.constant 0 : i32
    %c0_i32_0 = arith.constant 0 : i32
    return %arg0, %c0_i32 : i32, i32
  }
  func.func @transform_1(%arg0: i32) -> (i32, i32) {
    %c0_i32 = arith.constant 0 : i32
    %c0_i32_0 = arith.constant 0 : i32
    %c0_i32_1 = arith.constant 0 : i32
    return %c0_i32, %c0_i32_0 : i32, i32
  }
  func.func @transform_2(%arg0: i32) -> (i32, i32) {
    %c0_i32 = arith.constant 0 : i32
    %c0_i32_0 = arith.constant 0 : i32
    %c0_i32_1 = arith.constant 0 : i32
    return %c0_i32, %c0_i32_0 : i32, i32
  }
  func.func @transform_3(%arg0: i32) -> (i32, i32) {
    %c0_i32 = arith.constant 0 : i32
    %c0_i32_0 = arith.constant 0 : i32
    %c0_i32_1 = arith.constant 0 : i32
    return %c0_i32, %c0_i32_0 : i32, i32
  }
  func.func @transform_4(%arg0: i32) -> (i32, i32) {
    %c0_i32 = arith.constant 0 : i32
    %c0_i32_0 = arith.constant 0 : i32
    %c0_i32_1 = arith.constant 0 : i32
    return %c0_i32, %c0_i32_0 : i32, i32
  }
  func.func @transform_5(%arg0: i32) -> (i32, i32) {
    %c0_i32 = arith.constant 0 : i32
    %c0_i32_0 = arith.constant 0 : i32
    %c0_i32_1 = arith.constant 0 : i32
    return %c0_i32, %c0_i32_0 : i32, i32
  }
  func.func @transform_6(%arg0: i32) -> (i32, i32) {
    %c0_i32 = arith.constant 0 : i32
    %c0_i32_0 = arith.constant 0 : i32
    %c0_i32_1 = arith.constant 0 : i32
    return %c0_i32, %c0_i32_0 : i32, i32
  }
  func.func @transform_7(%arg0: i32) -> (i32, i32) {
    %c0_i32 = arith.constant 0 : i32
    %c0_i32_0 = arith.constant 0 : i32
    %c0_i32_1 = arith.constant 0 : i32
    return %c0_i32, %c0_i32_0 : i32, i32
  }
  func.func @transform_8(%arg0: i32) -> (i32, i32) {
    %c0_i32 = arith.constant 0 : i32
    %c0_i32_0 = arith.constant 0 : i32
    %c0_i32_1 = arith.constant 0 : i32
    return %c0_i32, %c0_i32_0 : i32, i32
  }
  func.func @transform_9(%arg0: i32) -> (i32, i32) {
    %c0_i32 = arith.constant 0 : i32
    %c0_i32_0 = arith.constant 0 : i32
    %c0_i32_1 = arith.constant 0 : i32
    return %c0_i32, %c0_i32_0 : i32, i32
  }
  func.func @transform_10(%arg0: i32) -> (i32, i32) {
    %c0_i32 = arith.constant 0 : i32
    %c0_i32_0 = arith.constant 0 : i32
    %c0_i32_1 = arith.constant 0 : i32
    return %c0_i32, %c0_i32_0 : i32, i32
  }
  func.func @transform_11(%arg0: i32) -> (i32, i32, i32) {
    %c0_i32 = arith.constant 0 : i32
    %c0_i32_0 = arith.constant 0 : i32
    %c0_i32_1 = arith.constant 0 : i32
    return %arg0, %c0_i32, %c0_i32_0 : i32, i32, i32
  }
}

</mosaic_0001>

<bundles_post_ra>
// kernel: tpu_custom_call.1
= control target key start
LH: loop header
LB: loop body
LE: loop exit
PB: predicated region body
PF: predicated region fallthrough
CT: control target
= control target key end

     0   :  { %s2599_s0 = inlined_call_operand.vmem [shape: bf16[128,170], index: 0, kind: input, shape index: {}]   ;;  %s2600_s1 = inlined_call_operand.vmem [shape: bf16[170,256], index: 1, kind: input, shape index: {}]   ;;  %s2601_s2 = inlined_call_operand.vmem [shape: f32[1,256], index: 2, kind: input, shape index: {}]   ;;  %s2602_s3 = inlined_call_operand.hbm [shape: bf16[256,256], index: 3, kind: input, shape index: {}]   ;;  %s2603_s4 = inlined_call_operand.vmem [shape: f32[1,256], index: 4, kind: input, shape index: {}]   ;;  %s2604_s5 = inlined_call_operand.hbm [shape: bf16[256,256], index: 5, kind: input, shape index: {}]   ;;  %s2605_s6 = inlined_call_operand.vmem [shape: f32[1,256], index: 6, kind: input, shape index: {}]   ;;  %s2606_s7 = inlined_call_operand.hbm [shape: bf16[256,256], index: 7, kind: input, shape index: {}]   ;;  %s2607_s8 = inlined_call_operand.vmem [shape: f32[1,256], index: 8, kind: input, shape index: {}]   ;;  %s2608_s9 = inlined_call_operand.vmem [shape: bf16[1,256], index: 9, kind: input, shape index: {}]   ;;  %s2609_s10 = inlined_call_operand.<no memory space> [shape: f32[1,1], index: 10, kind: input, shape index: {}]   ;;  %s2610_s11 = inlined_call_operand.hbm [shape: f32[1,1,128], index: 11, kind: output, shape index: {}]  }
   0x1   :  { %v16_v0 = vstv %s2609_s10 }
   0x2   :  { %17 = vst [vmem:[#allocation2] sm:$0x1] %v16_v0 }
   0x3   :  { %18 = vsyncpa [#allocation4], 0 }
   0x4   :  { %19 = vsyncpa [#allocation7], 0 }
   0x5   :  { %20 = vsyncpa [#allocation5], 0  ;;  %s2153_s19 = smov [#allocation6]   ;;  %s2154_s21 = smov [#allocation3]  }
   0x6   :  { %s46_s20 = sshll.u32 %s2153_s19, 4  ;;  %s32_s22 = sshll.u32 %s2154_s21, 4  ;;  %s47_s20 = int_to_ptr.vmem [resolvable:$true] %s46_s20  ;;  %s2224_s22 = int_to_ptr.vmem [resolvable:$true] %s32_s22 }
   0x7   :  { %s2059_s25 = scalar_lea.hbm %s2604_s5, 4096 }
   0x8   :  { %p2060_p0 = scmp.ne.s32.totalorder %s2604_s5, %s2059_s25  ;;  %p2063_p1 = scmp.lt.u32.totalorder %s2059_s25, %s2604_s5 }
   0xa   :  { %p2065_p2 = pnand %p2063_p1, %p2060_p0 }
   0xc   :  { %2068 = shalt.err (!%p2065_p2)
}
   0xd   :  { %s2069_s29 = scalar_lea.vmem %s47_s20, 4096  ;;  %p2074_p4 = scmp.lt.s32.totalorder %s47_s20, %s47_s20 }
   0xe   :  { %p2070_p3 = scmp.ne.s32.totalorder %s47_s20, %s2069_s29  ;;  %p2075_p5 = scmp.lt.s32.totalorder %s2069_s29, %s2069_s29 }
  0x10   :  { %p2076_p6 = por %p2075_p5, %p2074_p4 }
  0x12   :  { %p2077_p7 = pnand %p2076_p6, %p2070_p3 }
  0x14   :  { %2080 = shalt.err (!%p2077_p7)
}
  0x15   :  { %s2155_s30 = smov 128   ;;  %s2156_s12 = smov 8  }
  0x16   :  { %52 = dma.hbm_to_vmem [thread:$0]  %s2604_s5, 4096, %s47_s20, [#allocation7], %s2155_s30, %s2155_s30, %s2156_s12  }
  0x17   :  { %s2081_s17 = scalar_lea.hbm %s2602_s3, 4096 }
  0x18   :  { %p2082_p8 = scmp.ne.s32.totalorder %s2602_s3, %s2081_s17  ;;  %p2085_p9 = scmp.lt.u32.totalorder %s2081_s17, %s2602_s3 }
  0x1a   :  { %p2087_p10 = pnand %p2085_p9, %p2082_p8 }
  0x1c   :  { %2090 = shalt.err (!%p2087_p10)
}
  0x1d   :  { %s2091_s24 = scalar_lea.vmem %s2224_s22, 4096  ;;  %p2096_p12 = scmp.lt.s32.totalorder %s2224_s22, %s2224_s22 }
  0x1e   :  { %p2092_p11 = scmp.ne.s32.totalorder %s2224_s22, %s2091_s24  ;;  %p2097_p13 = scmp.lt.s32.totalorder %s2091_s24, %s2091_s24 }
  0x20   :  { %p2098_p0 = por %p2097_p13, %p2096_p12 }
  0x22   :  { %p2099_p1 = pnand %p2098_p0, %p2092_p11 }
  0x24   :  { %2102 = shalt.err (!%p2099_p1)
}
  0x25   :  { %38 = dma.hbm_to_vmem [thread:$0]  %s2602_s3, 4096, %s2224_s22, [#allocation4], %s2155_s30, %s2155_s30, %s2156_s12  }
  0x26   :  { %s2157_s25 = smov [#allocation8]   ;;  %s2103_s28 = scalar_lea.hbm %s2606_s7, 4096 }
  0x27   :  { %s60_s26 = sshll.u32 %s2157_s25, 4  ;;  %p2104_p2 = scmp.ne.s32.totalorder %s2606_s7, %s2103_s28  ;;  %s61_s26 = int_to_ptr.vmem [resolvable:$true] %s60_s26 }
  0x28   :  { %p2107_p3 = scmp.lt.u32.totalorder %s2103_s28, %s2606_s7 }
  0x2a   :  { %p2109_p4 = pnand %p2107_p3, %p2104_p2 }
  0x2c   :  { %2112 = shalt.err (!%p2109_p4)
}
  0x2d   :  { %s2113_s16 = scalar_lea.vmem %s61_s26, 4096  ;;  %p2118_p6 = scmp.lt.s32.totalorder %s61_s26, %s61_s26 }
  0x2e   :  { %p2114_p5 = scmp.ne.s32.totalorder %s61_s26, %s2113_s16  ;;  %p2119_p7 = scmp.lt.s32.totalorder %s2113_s16, %s2113_s16 }
  0x30   :  { %p2120_p8 = por %p2119_p7, %p2118_p6 }
  0x32   :  { %p2121_p9 = pnand %p2120_p8, %p2114_p5 }
  0x34   :  { %2124 = shalt.err (!%p2121_p9)
}
  0x35   :  { %66 = dma.hbm_to_vmem [thread:$0]  %s2606_s7, 4096, %s61_s26, [#allocation7], %s2155_s30, %s2155_s30, %s2156_s12  }
  0x36   :  { %2147 = dma.done.wait [#allocation4], 4096  }
  0x37   :  { %2148 = vsyncadd [#allocation4], 4294963200 }
  0x38   :  { %2149 = dma.done.wait [#allocation7], 8192  }
  0x39   :  { %2150 = vsyncadd [#allocation7], 4294959104  ;;  %v1854_v1 = vld [vmem:[%s2600_s1 + $0x4] ss:$8 sps:$4 sm:$0xff]   ;;  %v1856_v2 = vld [vmem:[%s2600_s1] ss:$8 sps:$4 sm:$0xff]  }
  0x3a   :  { %345 = vmatprep.subr.bf16.mxu0 %v1854_v1  ;;  %v1857_v3 = vld [vmem:[%s2600_s1 + $0x14] ss:$8 sps:$4 sm:$0xff]   ;;  %v1859_v4 = vld [vmem:[%s2600_s1 + $0x10] ss:$8 sps:$4 sm:$0xff]   ;;  %v1860_v5 = vld [vmem:[%s2600_s1 + $0x24] ss:$8 sps:$4 sm:$0xff]  }
  0x3b   :  { %346 = vmatpush1.bf16.msra.mxu0 %v1856_v2  ;;  %v1862_v6 = vld [vmem:[%s2600_s1 + $0x20] ss:$8 sps:$4 sm:$0xff]   ;;  %v1863_v7 = vld [vmem:[%s2600_s1 + $0x34] ss:$8 sps:$4 sm:$0xff]   ;;  %v1865_v8 = vld [vmem:[%s2600_s1 + $0x30] ss:$8 sps:$4 sm:$0xff]  }
  0x3c   :  { %347 = vmatprep.subr.bf16.mxu0 %v1857_v3  ;;  %v1866_v9 = vld [vmem:[%s2600_s1 + $0x44] ss:$8 sps:$4 sm:$0xff]   ;;  %v1868_v10 = vld [vmem:[%s2600_s1 + $0x40] ss:$8 sps:$4 sm:$0xff]   ;;  %v1869_v11 = vld [vmem:[%s2600_s1 + $0x54] ss:$8 sps:$4 sm:$0xff]  }
  0x3d   :  { %vm313_vm0 = vcmask 343040   ;;  %v1889_v12 = vld [vmem:[%s2599_s0 + $0x4] ss:$8 sps:$4 sm:$0xff]   ;;  %v1871_v13 = vld [vmem:[%s2600_s1 + $0x50] ss:$8 sps:$4 sm:$0xff]   ;;  %vm338_vm1 = vcmask 1044480  }
  0x3e   :  { %1739 = vmatprep.mubr.msk.bf16.mxu0 %vm313_vm0, %v1889_v12  ;;  %v1872_v14 = vld [vmem:[%s2600_s1 + $0x64] ss:$8 sps:$4 sm:$0xff]   ;;  %v1874_v15 = vld [vmem:[%s2600_s1 + $0x60] ss:$8 sps:$4 sm:$0xff]   ;;  %v1875_v16 = vld [vmem:[%s2600_s1 + $0x74] ss:$8 sps:$4 sm:$0xff]  }
  0x3f   :  { %348 = vmatpush1.bf16.msra.mxu0 %v1859_v4  ;;  %v1877_v17 = vld [vmem:[%s2600_s1 + $0x70] ss:$8 sps:$4 sm:$0xff]   ;;  %v1913_v19 = vld [vmem:[#allocation3] ss:$8 sps:$4 sm:$0xff]   ;;  %v1881_v25 = vld [vmem:[%s2600_s1 + $0x94] ss:$8 sps:$4 sm:$0xff]  }
  0x40   :  { %349 = vmatprep.subr.bf16.mxu0 %v1860_v5  ;;  %v1911_v18 = vld [vmem:[#allocation3 + $0x4] ss:$8 sps:$4 sm:$0xff]   ;;  %v1914_v20 = vld [vmem:[#allocation3 + $0x14] ss:$8 sps:$4 sm:$0xff]   ;;  %v1916_v22 = vld [vmem:[#allocation3 + $0x10] ss:$8 sps:$4 sm:$0xff]  }
  0x41   :  { %v1878_v21 = vld [vmem:[%s2600_s1 + $0x84] ss:$8 sps:$4 sm:$0xff]   ;;  %710 = vmatprep.subr.bf16.mxu1 %v1911_v18  ;;  %v1880_v24 = vld [vmem:[%s2600_s1 + $0x80] ss:$8 sps:$4 sm:$0xff]   ;;  %v1883_v27 = vld [vmem:[%s2600_s1 + $0x90] ss:$8 sps:$4 sm:$0xff]  }
  0x42   :  { %711 = vmatpush1.bf16.msra.mxu1 %v1913_v19  ;;  %v1917_v23 = vld [vmem:[#allocation3 + $0x24] ss:$8 sps:$4 sm:$0xff]   ;;  %v1919_v26 = vld [vmem:[#allocation3 + $0x20] ss:$8 sps:$4 sm:$0xff]   ;;  %v1920_v28 = vld [vmem:[#allocation3 + $0x34] ss:$8 sps:$4 sm:$0xff]  }
  0x43   :  { %350 = vmatpush1.bf16.msra.mxu0 %v1862_v6  ;;  %712 = vmatprep.subr.bf16.mxu1 %v1914_v20  ;;  %v1884_v29 = vld [vmem:[%s2600_s1 + $0xa4] ss:$8 sps:$4 sm:$0x1f]   ;;  %v1886_v30 = vld [vmem:[%s2600_s1 + $0xa0] ss:$8 sps:$4 sm:$0x1f]  }
  0x44   :  { %351 = vmatprep.subr.bf16.mxu0 %v1863_v7  ;;  %v1922_v31 = vld [vmem:[#allocation3 + $0x30] ss:$8 sps:$4 sm:$0xff]   ;;  %v1923_v32 = vld [vmem:[#allocation3 + $0x44] ss:$8 sps:$4 sm:$0xff]   ;;  %v340_v33 = vsel %vm338_vm1, %v1886_v30, 0 }
  0x45   :  { %v1887_v34 = vld [vmem:[%s2599_s0] ss:$8 sps:$4 sm:$0xff]   ;;  %v1890_v36 = vld [vmem:[%s2599_s0 + $0x14] ss:$8 sps:$4 sm:$0xff]   ;;  %v1892_v41 = vld [vmem:[%s2599_s0 + $0x10] ss:$8 sps:$4 sm:$0xff]  }
  0x46   :  { %713 = vmatpush1.bf16.msra.mxu1 %v1916_v22  ;;  %v1925_v35 = vld [vmem:[#allocation3 + $0x40] ss:$8 sps:$4 sm:$0xff]   ;;  %v1926_v37 = vld [vmem:[#allocation3 + $0x54] ss:$8 sps:$4 sm:$0xff]   ;;  %v1928_v38 = vld [vmem:[#allocation3 + $0x50] ss:$8 sps:$4 sm:$0xff]  }
  0x47   :  { %352 = vmatpush1.bf16.msra.mxu0 %v1865_v8  ;;  %714 = vmatprep.subr.bf16.mxu1 %v1917_v23  ;;  %v1929_v39 = vld [vmem:[#allocation3 + $0x64] ss:$8 sps:$4 sm:$0xff]   ;;  %v1931_v40 = vld [vmem:[#allocation3 + $0x60] ss:$8 sps:$4 sm:$0xff]   ;;  %v1932_v42 = vld [vmem:[#allocation3 + $0x74] ss:$8 sps:$4 sm:$0xff]  }
  0x48   :  { %353 = vmatprep.subr.bf16.mxu0 %v1866_v9  ;;  %v1893_v43 = vld [vmem:[%s2599_s0 + $0x24] ss:$8 sps:$4 sm:$0xff]   ;;  %v1934_v44 = vld [vmem:[#allocation3 + $0x70] ss:$8 sps:$4 sm:$0xff]   ;;  %v1895_v47 = vld [vmem:[%s2599_s0 + $0x20] ss:$8 sps:$4 sm:$0xff]  }
  0x49   :  { %v1935_v45 = vld [vmem:[#allocation3 + $0x84] ss:$8 sps:$4 sm:$0xff]   ;;  %v1937_v46 = vld [vmem:[#allocation3 + $0x80] ss:$8 sps:$4 sm:$0xff]   ;;  %v1938_v48 = vld [vmem:[#allocation3 + $0x94] ss:$8 sps:$4 sm:$0xff]  }
  0x4a   :  { %715 = vmatpush1.bf16.msra.mxu1 %v1919_v26  ;;  %v1896_v49 = vld [vmem:[%s2599_s0 + $0x34] ss:$8 sps:$4 sm:$0xff]   ;;  %v1941_v51 = vld [vmem:[#allocation3 + $0xa4] ss:$8 sps:$4 sm:$0xff]   ;;  %v1943_v52 = vld [vmem:[#allocation3 + $0xa0] ss:$8 sps:$4 sm:$0xff]  }
  0x4b   :  { %354 = vmatpush1.bf16.msra.mxu0 %v1868_v10  ;;  %716 = vmatprep.subr.bf16.mxu1 %v1920_v28  ;;  %v1940_v50 = vld [vmem:[#allocation3 + $0x90] ss:$8 sps:$4 sm:$0xff]   ;;  %v1944_v54 = vld [vmem:[#allocation3 + $0xb4] ss:$8 sps:$4 sm:$0xff]   ;;  %v1899_v55 = vld [vmem:[%s2599_s0 + $0x44] ss:$8 sps:$4 sm:$0xff]  }
  0x4c   :  { %355 = vmatprep.subr.bf16.mxu0 %v1869_v11  ;;  %v1898_v53 = vld [vmem:[%s2599_s0 + $0x30] ss:$8 sps:$4 sm:$0xff]   ;;  %v1949_v58 = vld [vmem:[#allocation3 + $0xc0] ss:$8 sps:$4 sm:$0xff]   ;;  %v1902_v61 = vld [vmem:[%s2599_s0 + $0x54] ss:$8 sps:$4 sm:$0xff]  }
  0x4d   :  { %v1946_v56 = vld [vmem:[#allocation3 + $0xb0] ss:$8 sps:$4 sm:$0xff]   ;;  %v1947_v57 = vld [vmem:[#allocation3 + $0xc4] ss:$8 sps:$4 sm:$0xff]   ;;  %v1950_v60 = vld [vmem:[#allocation3 + $0xd4] ss:$8 sps:$4 sm:$0xff]  }
  0x4e   :  { %717 = vmatpush1.bf16.msra.mxu1 %v1922_v31  ;;  %v1901_v59 = vld [vmem:[%s2599_s0 + $0x40] ss:$8 sps:$4 sm:$0xff]   ;;  %v1904_v62 = vld [vmem:[%s2599_s0 + $0x50] ss:$8 sps:$4 sm:$0xff]   ;;  %v1905_v63 = vld [vmem:[%s2599_s0 + $0x64] ss:$8 sps:$4 sm:$0xff]  }
  0x4f   :  { %356 = vmatpush1.bf16.msra.mxu0 %v1871_v13  ;;  %718 = vmatprep.subr.bf16.mxu1 %v1923_v32  ;;  %v1907_v0 = vld [vmem:[%s2599_s0 + $0x60] ss:$8 sps:$4 sm:$0xff]   ;;  %v1908_v1 = vld [vmem:[%s2599_s0 + $0x74] ss:$8 sps:$4 sm:$0xff]   ;;  %v1910_v2 = vld [vmem:[%s2599_s0 + $0x70] ss:$8 sps:$4 sm:$0xff]  }
  0x50   :  { %357 = vmatprep.subr.bf16.mxu0 %v1872_v14  ;;  %v1952_v3 = vld [vmem:[#allocation3 + $0xd0] ss:$8 sps:$4 sm:$0xff]   ;;  %v1953_v4 = vld [vmem:[#allocation3 + $0xe4] ss:$8 sps:$4 sm:$0xff]   ;;  %v1955_v5 = vld [vmem:[#allocation3 + $0xe0] ss:$8 sps:$4 sm:$0xff]  }
  0x51   :  { %v1956_v6 = vld [vmem:[#allocation3 + $0xf4] ss:$8 sps:$4 sm:$0xff]   ;;  %v1958_v7 = vld [vmem:[#allocation3 + $0xf0] ss:$8 sps:$4 sm:$0xff]   ;;  %v1959_v8 = vld [vmem:[#allocation6] ss:$8 sps:$4 sm:$0xff]  }
  0x52   :  { %719 = vmatpush1.bf16.msra.mxu1 %v1925_v35  ;;  %v1961_v9 = vld [vmem:[#allocation6 + $0x4] ss:$8 sps:$4 sm:$0xff]   ;;  %v1964_v10 = vld [vmem:[#allocation6 + $0x14] ss:$8 sps:$4 sm:$0xff]   ;;  %v1962_v11 = vld [vmem:[#allocation6 + $0x10] ss:$8 sps:$4 sm:$0xff]  }
  0x53   :  { %358 = vmatpush1.bf16.msra.mxu0 %v1874_v15  ;;  %720 = vmatprep.subr.bf16.mxu1 %v1926_v37  ;;  %v1967_v12 = vld [vmem:[#allocation6 + $0x24] ss:$8 sps:$4 sm:$0xff]   ;;  %v1965_v13 = vld [vmem:[#allocation6 + $0x20] ss:$8 sps:$4 sm:$0xff]   ;;  %v1970_v14 = vld [vmem:[#allocation6 + $0x34] ss:$8 sps:$4 sm:$0xff]  }
  0x54   :  { %359 = vmatprep.subr.bf16.mxu0 %v1875_v16  ;;  %v1968_v15 = vld [vmem:[#allocation6 + $0x30] ss:$8 sps:$4 sm:$0xff]   ;;  %v1973_v16 = vld [vmem:[#allocation6 + $0x44] ss:$8 sps:$4 sm:$0xff]   ;;  %v1976_v18 = vld [vmem:[#allocation6 + $0x54] ss:$8 sps:$4 sm:$0xff]  }
  0x55   :  { %v1974_v19 = vld [vmem:[#allocation6 + $0x50] ss:$8 sps:$4 sm:$0xff]   ;;  %v1979_v20 = vld [vmem:[#allocation6 + $0x64] ss:$8 sps:$4 sm:$0xff]   ;;  %v1982_v22 = vld [vmem:[#allocation6 + $0x74] ss:$8 sps:$4 sm:$0xff]  }
  0x56   :  { %721 = vmatpush1.bf16.msra.mxu1 %v1928_v38  ;;  %v1980_v23 = vld [vmem:[#allocation6 + $0x70] ss:$8 sps:$4 sm:$0xff]   ;;  %v1988_v26 = vld [vmem:[#allocation6 + $0x94] ss:$8 sps:$4 sm:$0xff]   ;;  %v1991_v28 = vld [vmem:[#allocation6 + $0xa4] ss:$8 sps:$4 sm:$0xff]  }
  0x57   :  { %360 = vmatpush1.bf16.msra.mxu0 %v1877_v17  ;;  %722 = vmatprep.subr.bf16.mxu1 %v1929_v39  ;;  %v1971_v17 = vld [vmem:[#allocation6 + $0x40] ss:$8 sps:$4 sm:$0xff]   ;;  %v1994_v30 = vld [vmem:[#allocation6 + $0xb4] ss:$8 sps:$4 sm:$0xff]   ;;  %v1992_v31 = vld [vmem:[#allocation6 + $0xb0] ss:$8 sps:$4 sm:$0xff]  }
  0x58   :  { %361 = vmatprep.subr.bf16.mxu0 %v1878_v21  ;;  %v1977_v21 = vld [vmem:[#allocation6 + $0x60] ss:$8 sps:$4 sm:$0xff]   ;;  %v1997_v32 = vld [vmem:[#allocation6 + $0xc4] ss:$8 sps:$4 sm:$0xff]   ;;  %v2000_v35 = vld [vmem:[#allocation6 + $0xd4] ss:$8 sps:$4 sm:$0xff]  }
  0x59   :  { %v1998_v37 = vld [vmem:[#allocation6 + $0xd0] ss:$8 sps:$4 sm:$0xff]   ;;  %v121_v39 = vld [vmem:[%s2601_s2] sm:$0x3] }
  0x5a   :  { %723 = vmatpush1.bf16.msra.mxu1 %v1931_v40 }
  0x5b   :  { %362 = vmatpush1.bf16.msra.mxu0 %v1880_v24  ;;  %724 = vmatprep.subr.bf16.mxu1 %v1932_v42  ;;  %v1985_v24 = vld [vmem:[#allocation6 + $0x84] ss:$8 sps:$4 sm:$0xff]  }
  0x5c   :  { %363 = vmatprep.subr.bf16.mxu0 %v1881_v25  ;;  %v1983_v25 = vld [vmem:[#allocation6 + $0x80] ss:$8 sps:$4 sm:$0xff]  }
  0x5e   :  { %725 = vmatpush1.bf16.msra.mxu1 %v1934_v44 }
  0x5f   :  { %364 = vmatpush1.bf16.msra.mxu0 %v1883_v27  ;;  %726 = vmatprep.subr.bf16.mxu1 %v1935_v45  ;;  %v1986_v27 = vld [vmem:[#allocation6 + $0x90] ss:$8 sps:$4 sm:$0xff]  }
  0x60   :  { %1738 = vmatprep.subr.msk.bf16.mxu0 %vm338_vm1, %v1884_v29  ;;  %v1989_v29 = vld [vmem:[#allocation6 + $0xa0] ss:$8 sps:$4 sm:$0xff]  }
  0x62   :  { %727 = vmatpush1.bf16.msra.mxu1 %v1937_v46 }
  0x63   :  { %366 = vmatpush1.bf16.msra.mxu0 %v340_v33  ;;  %728 = vmatprep.subr.bf16.mxu1 %v1938_v48  ;;  %v123_v33 = vlaneseq }
  0x64   :  { %1075 = vmatprep.subr.bf16.mxu0 %v1961_v9 }
  0x66   :  { %378 = vmatmul.mubr.bf16.vlgmr.msra.gmra.mrb[0].mxu0 %v1887_v34  ;;  %729 = vmatpush1.bf16.msra.mxu1 %v1940_v50  ;;  %v1995_v34 = vld [vmem:[#allocation6 + $0xc0] ss:$8 sps:$4 sm:$0xff]  }
  0x67   :  { %1740 = vmatprep.mubr.msk.bf16.mxu0 %vm313_vm0, %v1890_v36  ;;  %730 = vmatprep.subr.bf16.mxu1 %v1941_v51  ;;  %v2398_v36 = vshrl.u32 %v123_v33, 7 }
  0x68   :  { %1076 = vmatpush1.bf16.msra.mxu0 %v1959_v8 }
  0x69   :  { %1077 = vmatprep.subr.bf16.mxu0 %v1964_v10  ;;  %v2401_v38 = vsub.s32 0, %v2398_v36  ;;  %v2407_v40 = vsub.s32 1, %v2398_v36 }
  0x6a   :  { %731 = vmatpush1.bf16.msra.mxu1 %v1943_v52 }
  0x6b   :  { %732 = vmatprep.subr.bf16.mxu1 %v1944_v54  ;;  %v2413_v42 = vrot.slane %v121_v39, %v2407_v40 }
  0x6c   :  { %1078 = vmatpush1.bf16.msra.mxu0 %v1962_v11 }
  0x6d   :  { %1079 = vmatprep.subr.bf16.mxu0 %v1967_v12 }
  0x6e   :  { %388 = vmatmul.mubr.bf16.gmra.mrb[4].mxu0 %v1892_v41  ;;  %733 = vmatpush1.bf16.msra.mxu1 %v1946_v56  ;;  %v2410_v41 = vrot.slane %v121_v39, %v2401_v38 }
  0x6f   :  { %1741 = vmatprep.mubr.msk.bf16.mxu0 %vm313_vm0, %v1893_v43  ;;  %734 = vmatprep.subr.bf16.mxu1 %v1947_v57 }
  0x70   :  { %1080 = vmatpush1.bf16.msra.mxu0 %v1965_v13 }
  0x71   :  { %1081 = vmatprep.subr.bf16.mxu0 %v1970_v14 }
  0x72   :  { %735 = vmatpush1.bf16.msra.mxu1 %v1949_v58 }
  0x73   :  { %736 = vmatprep.subr.bf16.mxu1 %v1950_v60 }
  0x74   :  { %1082 = vmatpush1.bf16.msra.mxu0 %v1968_v15 }
  0x75   :  { %1083 = vmatprep.subr.bf16.mxu0 %v1973_v16 }
  0x76   :  { %398 = vmatmul.mubr.bf16.gmra.mrb[8].mxu0 %v1895_v47  ;;  %737 = vmatpush1.bf16.msra.mxu1 %v1952_v3 }
  0x77   :  { %1742 = vmatprep.mubr.msk.bf16.mxu0 %vm313_vm0, %v1896_v49  ;;  %738 = vmatprep.subr.bf16.mxu1 %v1953_v4 }
  0x78   :  { %1084 = vmatpush1.bf16.msra.mxu0 %v1971_v17 }
  0x79   :  { %1085 = vmatprep.subr.bf16.mxu0 %v1976_v18 }
  0x7a   :  { %739 = vmatpush1.bf16.msra.mxu1 %v1955_v5 }
  0x7b   :  { %740 = vmatprep.subr.bf16.mxu1 %v1956_v6 }
  0x7c   :  { %1086 = vmatpush1.bf16.msra.mxu0 %v1974_v19 }
  0x7d   :  { %1087 = vmatprep.subr.bf16.mxu0 %v1979_v20 }
  0x7e   :  { %408 = vmatmul.mubr.bf16.gmra.mrb[12].mxu0 %v1898_v53  ;;  %741 = vmatpush1.bf16.msra.mxu1 %v1958_v7 }
  0x7f   :  { %1743 = vmatprep.mubr.msk.bf16.mxu0 %vm313_vm0, %v1899_v55 }
  0x80   :  { %1088 = vmatpush1.bf16.msra.mxu0 %v1977_v21 }
  0x81   :  { %1089 = vmatprep.subr.bf16.mxu0 %v1982_v22 }
  0x84   :  { %1090 = vmatpush1.bf16.msra.mxu0 %v1980_v23 }
  0x85   :  { %1091 = vmatprep.subr.bf16.mxu0 %v1985_v24 }
  0x86   :  { %418 = vmatmul.mubr.bf16.gmra.mrb[16].mxu0 %v1901_v59 }
  0x87   :  { %1744 = vmatprep.mubr.msk.bf16.mxu0 %vm313_vm0, %v1902_v61 }
  0x88   :  { %1092 = vmatpush1.bf16.msra.mxu0 %v1983_v25 }
  0x89   :  { %1093 = vmatprep.subr.bf16.mxu0 %v1988_v26 }
  0x8c   :  { %1094 = vmatpush1.bf16.msra.mxu0 %v1986_v27 }
  0x8d   :  { %1095 = vmatprep.subr.bf16.mxu0 %v1991_v28 }
  0x8e   :  { %428 = vmatmul.mubr.bf16.gmra.mrb[20].mxu0 %v1904_v62 }
  0x8f   :  { %1745 = vmatprep.mubr.msk.bf16.mxu0 %vm313_vm0, %v1905_v63 }
  0x90   :  { %1096 = vmatpush1.bf16.msra.mxu0 %v1989_v29 }
  0x91   :  { %1097 = vmatprep.subr.bf16.mxu0 %v1994_v30 }
  0x94   :  { %1098 = vmatpush1.bf16.msra.mxu0 %v1992_v31 }
  0x95   :  { %1099 = vmatprep.subr.bf16.mxu0 %v1997_v32 }
  0x96   :  { %438 = vmatmul.mubr.bf16.gmra.mrb[24].mxu0 %v1907_v0 }
  0x97   :  { %1746 = vmatprep.mubr.msk.bf16.mxu0 %vm313_vm0, %v1908_v1 }
  0x98   :  { %1100 = vmatpush1.bf16.msra.mxu0 %v1995_v34 }
  0x99   :  { %1101 = vmatprep.subr.bf16.mxu0 %v2000_v35 }
  0x9c   :  { %1102 = vmatpush1.bf16.msra.mxu0 %v1998_v37 }
  0x9e   :  { %448 = vmatmul.mubr.bf16.gmra.mrb[28].mxu0 %v1910_v2 }
 0x139   :  { %v379_v43 = vpop.f32.mrb[0].mxu0 }
 0x13a   :  { %v380_v44 = vadd.f32 %v379_v43, %v2410_v41  ;;  %v381_v45 = vpop.f32.mrb[1].mxu0 }
 0x13b   :  { %v382_v46 = vadd.f32 %v381_v45, %v2413_v42  ;;  %v383_v47 = vpop.f32.mrb[2].mxu0 }
 0x13c   :  { %v384_v48 = vadd.f32 %v383_v47, %v2410_v41  ;;  %v385_v49 = vpop.f32.mrb[3].mxu0  ;;  %v458_v51 = vmax.f32 %v380_v44, 0.0 }
 0x13d   :  { %v386_v50 = vadd.f32 %v385_v49, %v2413_v42  ;;  %v459_v53 = vmax.f32 %v382_v46, 0.0 }
 0x13e   :  { %v460_v52 = vmax.f32 %v384_v48, 0.0 }
 0x13f   :  { %v461_v54 = vmax.f32 %v386_v50, 0.0 }
 0x140   :  { %v490_v55 = vpack.c.bf16 %v460_v52, %v458_v51 }
 0x141   :  { %v389_v56 = vpop.f32.mrb[4].mxu0  ;;  %v491_v57 = vpack.c.bf16 %v461_v54, %v459_v53 }
 0x142   :  { %v390_v58 = vadd.f32 %v389_v56, %v2410_v41  ;;  %v391_v59 = vpop.f32.mrb[5].mxu0 }
 0x143   :  { %v392_v60 = vadd.f32 %v391_v59, %v2413_v42  ;;  %v393_v61 = vpop.f32.mrb[6].mxu0  ;;  %742 = vmatprep.mubr.bf16.mxu1 %v491_v57 }
 0x144   :  { %v394_v62 = vadd.f32 %v393_v61, %v2410_v41  ;;  %v395_v63 = vpop.f32.mrb[7].mxu0  ;;  %743 = vmatmul.mubr.bf16.vlgmr.msra.gmra.mrb[0].mxu1 %v490_v55  ;;  %v462_v1 = vmax.f32 %v390_v58, 0.0 }
 0x145   :  { %v396_v0 = vadd.f32 %v395_v63, %v2413_v42  ;;  %v463_v3 = vmax.f32 %v392_v60, 0.0 }
 0x146   :  { %v464_v2 = vmax.f32 %v394_v62, 0.0 }
 0x147   :  { %v465_v4 = vmax.f32 %v396_v0, 0.0 }
 0x148   :  { %v492_v5 = vpack.c.bf16 %v464_v2, %v462_v1 }
 0x149   :  { %v493_v6 = vpack.c.bf16 %v465_v4, %v463_v3  ;;  %v399_v7 = vpop.f32.mrb[8].mxu0 }
 0x14a   :  { %v400_v8 = vadd.f32 %v399_v7, %v2410_v41  ;;  %v401_v9 = vpop.f32.mrb[9].mxu0 }
 0x14b   :  { %v402_v10 = vadd.f32 %v401_v9, %v2413_v42  ;;  %v403_v11 = vpop.f32.mrb[10].mxu0  ;;  %752 = vmatprep.mubr.bf16.mxu1 %v493_v6 }
 0x14c   :  { %v404_v12 = vadd.f32 %v403_v11, %v2410_v41  ;;  %v405_v13 = vpop.f32.mrb[11].mxu0  ;;  %753 = vmatmul.mubr.bf16.gmra.mrb[4].mxu1 %v492_v5  ;;  %v466_v15 = vmax.f32 %v400_v8, 0.0 }
 0x14d   :  { %v406_v14 = vadd.f32 %v405_v13, %v2413_v42  ;;  %v467_v17 = vmax.f32 %v402_v10, 0.0 }
 0x14e   :  { %v468_v16 = vmax.f32 %v404_v12, 0.0 }
 0x14f   :  { %v469_v18 = vmax.f32 %v406_v14, 0.0 }
 0x150   :  { %v494_v19 = vpack.c.bf16 %v468_v16, %v466_v15 }
 0x151   :  { %v495_v20 = vpack.c.bf16 %v469_v18, %v467_v17  ;;  %v409_v21 = vpop.f32.mrb[12].mxu0 }
 0x152   :  { %v410_v22 = vadd.f32 %v409_v21, %v2410_v41  ;;  %v411_v23 = vpop.f32.mrb[13].mxu0 }
 0x153   :  { %v412_v24 = vadd.f32 %v411_v23, %v2413_v42  ;;  %v413_v25 = vpop.f32.mrb[14].mxu0  ;;  %762 = vmatprep.mubr.bf16.mxu1 %v495_v20 }
 0x154   :  { %v414_v26 = vadd.f32 %v413_v25, %v2410_v41  ;;  %v415_v27 = vpop.f32.mrb[15].mxu0  ;;  %763 = vmatmul.mubr.bf16.gmra.mrb[8].mxu1 %v494_v19  ;;  %v470_v29 = vmax.f32 %v410_v22, 0.0 }
 0x155   :  { %v416_v28 = vadd.f32 %v415_v27, %v2413_v42  ;;  %v471_v31 = vmax.f32 %v412_v24, 0.0 }
 0x156   :  { %v472_v30 = vmax.f32 %v414_v26, 0.0 }
 0x157   :  { %v473_v32 = vmax.f32 %v416_v28, 0.0 }
 0x158   :  { %v496_v33 = vpack.c.bf16 %v472_v30, %v470_v29 }
 0x159   :  { %v497_v34 = vpack.c.bf16 %v473_v32, %v471_v31  ;;  %v419_v35 = vpop.f32.mrb[16].mxu0  ;;  %v2003_v32 = vld [vmem:[#allocation6 + $0xe4] ss:$8 sps:$4 sm:$0xff]  }
 0x15a   :  { %v420_v37 = vadd.f32 %v419_v35, %v2410_v41  ;;  %v421_v39 = vpop.f32.mrb[17].mxu0  ;;  %1103 = vmatprep.subr.bf16.mxu0 %v2003_v32  ;;  %v2004_v35 = vld [vmem:[#allocation6 + $0xf0] ss:$8 sps:$4 sm:$0xff]  }
 0x15b   :  { %v422_v43 = vadd.f32 %v421_v39, %v2413_v42  ;;  %v423_v44 = vpop.f32.mrb[18].mxu0  ;;  %772 = vmatprep.mubr.bf16.mxu1 %v497_v34  ;;  %v2006_v34 = vld [vmem:[#allocation6 + $0xf4] ss:$8 sps:$4 sm:$0xff]  }
 0x15c   :  { %v424_v45 = vadd.f32 %v423_v44, %v2410_v41  ;;  %v425_v46 = vpop.f32.mrb[19].mxu0  ;;  %773 = vmatmul.mubr.bf16.gmra.mrb[12].mxu1 %v496_v33  ;;  %v474_v48 = vmax.f32 %v420_v37, 0.0  ;;  %v2001_v33 = vld [vmem:[#allocation6 + $0xe0] ss:$8 sps:$4 sm:$0xff]   ;;  %v2009_v37 = vld [vmem:[#allocation8 + $0x4] ss:$8 sps:$4 sm:$0xff]  }
 0x15d   :  { %v426_v47 = vadd.f32 %v425_v46, %v2413_v42  ;;  %v475_v50 = vmax.f32 %v422_v43, 0.0  ;;  %1104 = vmatpush1.bf16.msra.mxu0 %v2001_v33  ;;  %v2012_v39 = vld [vmem:[#allocation8 + $0x14] ss:$8 sps:$4 sm:$0xff]   ;;  %1440 = vmatprep.subr.bf16.mxu1 %v2009_v37  ;;  %v2015_v43 = vld [vmem:[#allocation8 + $0x24] ss:$8 sps:$4 sm:$0xff]  }
 0x15e   :  { %v476_v49 = vmax.f32 %v424_v45, 0.0  ;;  %1105 = vmatprep.subr.bf16.mxu0 %v2006_v34  ;;  %v2013_v44 = vld [vmem:[#allocation8 + $0x20] ss:$8 sps:$4 sm:$0xff]   ;;  %v2018_v45 = vld [vmem:[#allocation8 + $0x34] ss:$8 sps:$4 sm:$0xff]  }
 0x15f   :  { %v477_v51 = vmax.f32 %v426_v47, 0.0  ;;  %v2016_v46 = vld [vmem:[#allocation8 + $0x30] ss:$8 sps:$4 sm:$0xff]   ;;  %v2021_v47 = vld [vmem:[#allocation8 + $0x44] ss:$8 sps:$4 sm:$0xff]  }
 0x160   :  { %v498_v52 = vpack.c.bf16 %v476_v49, %v474_v48  ;;  %v2019_v48 = vld [vmem:[#allocation8 + $0x40] ss:$8 sps:$4 sm:$0xff]   ;;  %v2024_v49 = vld [vmem:[#allocation8 + $0x54] ss:$8 sps:$4 sm:$0xff]  }
 0x161   :  { %v499_v53 = vpack.c.bf16 %v477_v51, %v475_v50  ;;  %v429_v54 = vpop.f32.mrb[20].mxu0  ;;  %1106 = vmatpush1.bf16.msra.mxu0 %v2004_v35  ;;  %v2022_v50 = vld [vmem:[#allocation8 + $0x50] ss:$8 sps:$4 sm:$0xff]   ;;  %v2027_v51 = vld [vmem:[#allocation8 + $0x64] ss:$8 sps:$4 sm:$0xff]  }
 0x162   :  { %v430_v55 = vadd.f32 %v429_v54, %v2410_v41  ;;  %v431_v56 = vpop.f32.mrb[21].mxu0  ;;  %v2028_v54 = vld [vmem:[#allocation8 + $0x70] ss:$8 sps:$4 sm:$0xff]  }
 0x163   :  { %v432_v57 = vadd.f32 %v431_v56, %v2413_v42  ;;  %v433_v58 = vpop.f32.mrb[22].mxu0  ;;  %782 = vmatprep.mubr.bf16.mxu1 %v499_v53  ;;  %v2030_v53 = vld [vmem:[#allocation8 + $0x74] ss:$8 sps:$4 sm:$0xff]   ;;  %v2031_v56 = vld [vmem:[#allocation8 + $0x80] ss:$8 sps:$4 sm:$0xff]  }
 0x164   :  { %v434_v59 = vadd.f32 %v433_v58, %v2410_v41  ;;  %v435_v60 = vpop.f32.mrb[23].mxu0  ;;  %783 = vmatmul.mubr.bf16.gmra.mrb[16].mxu1 %v498_v52  ;;  %v478_v62 = vmax.f32 %v430_v55, 0.0  ;;  %v2025_v52 = vld [vmem:[#allocation8 + $0x60] ss:$8 sps:$4 sm:$0xff]   ;;  %v2033_v55 = vld [vmem:[#allocation8 + $0x84] ss:$8 sps:$4 sm:$0xff]  }
 0x165   :  { %v436_v61 = vadd.f32 %v435_v60, %v2413_v42  ;;  %v479_v0 = vmax.f32 %v432_v57, 0.0  ;;  %v2036_v57 = vld [vmem:[#allocation8 + $0x94] ss:$8 sps:$4 sm:$0xff]   ;;  %v2034_v58 = vld [vmem:[#allocation8 + $0x90] ss:$8 sps:$4 sm:$0xff]  }
 0x166   :  { %v480_v63 = vmax.f32 %v434_v59, 0.0  ;;  %v2039_v59 = vld [vmem:[#allocation8 + $0xa4] ss:$8 sps:$4 sm:$0xff]   ;;  %v2037_v60 = vld [vmem:[#allocation8 + $0xa0] ss:$8 sps:$4 sm:$0xff]  }
 0x167   :  { %v481_v1 = vmax.f32 %v436_v61, 0.0  ;;  %v2042_v61 = vld [vmem:[#allocation8 + $0xb4] ss:$8 sps:$4 sm:$0xff]  }
 0x168   :  { %v500_v2 = vpack.c.bf16 %v480_v63, %v478_v62  ;;  %v2040_v62 = vld [vmem:[#allocation8 + $0xb0] ss:$8 sps:$4 sm:$0xff]   ;;  %v2045_v63 = vld [vmem:[#allocation8 + $0xc4] ss:$8 sps:$4 sm:$0xff]  }
 0x169   :  { %v501_v3 = vpack.c.bf16 %v481_v1, %v479_v0  ;;  %v439_v4 = vpop.f32.mrb[24].mxu0  ;;  %v2043_v0 = vld [vmem:[#allocation8 + $0xc0] ss:$8 sps:$4 sm:$0xff]   ;;  %v2048_v1 = vld [vmem:[#allocation8 + $0xd4] ss:$8 sps:$4 sm:$0xff]  }
 0x16a   :  { %v440_v5 = vadd.f32 %v439_v4, %v2410_v41  ;;  %v441_v6 = vpop.f32.mrb[25].mxu0 }
 0x16b   :  { %v442_v7 = vadd.f32 %v441_v6, %v2413_v42  ;;  %v443_v8 = vpop.f32.mrb[26].mxu0  ;;  %792 = vmatprep.mubr.bf16.mxu1 %v501_v3  ;;  %v538_v3 = vld [vmem:[%s2603_s4] sm:$0x3] }
 0x16c   :  { %v444_v9 = vadd.f32 %v443_v8, %v2410_v41  ;;  %v445_v10 = vpop.f32.mrb[27].mxu0  ;;  %793 = vmatmul.mubr.bf16.gmra.mrb[20].mxu1 %v500_v2  ;;  %v482_v12 = vmax.f32 %v440_v5, 0.0  ;;  %v2046_v2 = vld [vmem:[#allocation8 + $0xd0] ss:$8 sps:$4 sm:$0xff]   ;;  %v2451_v4 = vrot.slane %v538_v3, %v2401_v38  ;;  %v2454_v5 = vrot.slane %v538_v3, %v2407_v40 }
 0x16d   :  { %v446_v11 = vadd.f32 %v445_v10, %v2413_v42  ;;  %v483_v14 = vmax.f32 %v442_v7, 0.0 }
 0x16e   :  { %v484_v13 = vmax.f32 %v444_v9, 0.0 }
 0x16f   :  { %v485_v15 = vmax.f32 %v446_v11, 0.0 }
 0x170   :  { %v502_v16 = vpack.c.bf16 %v484_v13, %v482_v12 }
 0x171   :  { %v503_v17 = vpack.c.bf16 %v485_v15, %v483_v14  ;;  %v449_v18 = vpop.f32.mrb[28].mxu0 }
 0x172   :  { %v450_v19 = vadd.f32 %v449_v18, %v2410_v41  ;;  %v451_v20 = vpop.f32.mrb[29].mxu0 }
 0x173   :  { %v452_v21 = vadd.f32 %v451_v20, %v2413_v42  ;;  %v453_v22 = vpop.f32.mrb[30].mxu0  ;;  %802 = vmatprep.mubr.bf16.mxu1 %v503_v17 }
 0x174   :  { %v454_v23 = vadd.f32 %v453_v22, %v2410_v41  ;;  %v455_v24 = vpop.f32.mrb[31].mxu0  ;;  %803 = vmatmul.mubr.bf16.gmra.mrb[24].mxu1 %v502_v16  ;;  %v486_v26 = vmax.f32 %v450_v19, 0.0  ;;  %v2007_v41 = vld [vmem:[#allocation8] ss:$8 sps:$4 sm:$0xff]  }
 0x175   :  { %v456_v25 = vadd.f32 %v455_v24, %v2413_v42  ;;  %v487_v28 = vmax.f32 %v452_v21, 0.0  ;;  %1441 = vmatpush1.bf16.msra.mxu1 %v2007_v41  ;;  %v2010_v42 = vld [vmem:[#allocation8 + $0x10] ss:$8 sps:$4 sm:$0xff]  }
 0x176   :  { %v488_v27 = vmax.f32 %v454_v23, 0.0  ;;  %1442 = vmatprep.subr.bf16.mxu1 %v2012_v39 }
 0x177   :  { %v489_v29 = vmax.f32 %v456_v25, 0.0 }
 0x178   :  { %v504_v30 = vpack.c.bf16 %v488_v27, %v486_v26 }
 0x179   :  { %v505_v31 = vpack.c.bf16 %v489_v29, %v487_v28  ;;  %1443 = vmatpush1.bf16.msra.mxu1 %v2010_v42 }
 0x17a   :  { %1444 = vmatprep.subr.bf16.mxu1 %v2015_v43 }
 0x17b   :  { %812 = vmatprep.mubr.bf16.mxu1 %v505_v31 }
 0x17c   :  { %813 = vmatmul.mubr.bf16.gmra.mrb[28].mxu1 %v504_v30 }
 0x17d   :  { %1445 = vmatpush1.bf16.msra.mxu1 %v2013_v44 }
 0x17e   :  { %1446 = vmatprep.subr.bf16.mxu1 %v2018_v45 }
 0x181   :  { %1447 = vmatpush1.bf16.msra.mxu1 %v2016_v46 }
 0x182   :  { %1448 = vmatprep.subr.bf16.mxu1 %v2021_v47 }
 0x185   :  { %1449 = vmatpush1.bf16.msra.mxu1 %v2019_v48 }
 0x186   :  { %1450 = vmatprep.subr.bf16.mxu1 %v2024_v49 }
 0x189   :  { %1451 = vmatpush1.bf16.msra.mxu1 %v2022_v50 }
 0x18a   :  { %1452 = vmatprep.subr.bf16.mxu1 %v2027_v51 }
 0x18d   :  { %1453 = vmatpush1.bf16.msra.mxu1 %v2025_v52 }
 0x18e   :  { %1454 = vmatprep.subr.bf16.mxu1 %v2030_v53 }
 0x191   :  { %1455 = vmatpush1.bf16.msra.mxu1 %v2028_v54 }
 0x192   :  { %1456 = vmatprep.subr.bf16.mxu1 %v2033_v55 }
 0x195   :  { %1457 = vmatpush1.bf16.msra.mxu1 %v2031_v56 }
 0x196   :  { %1458 = vmatprep.subr.bf16.mxu1 %v2036_v57 }
 0x199   :  { %1459 = vmatpush1.bf16.msra.mxu1 %v2034_v58 }
 0x19a   :  { %1460 = vmatprep.subr.bf16.mxu1 %v2039_v59 }
 0x19d   :  { %1461 = vmatpush1.bf16.msra.mxu1 %v2037_v60 }
 0x19e   :  { %1462 = vmatprep.subr.bf16.mxu1 %v2042_v61 }
 0x1a1   :  { %1463 = vmatpush1.bf16.msra.mxu1 %v2040_v62 }
 0x1a2   :  { %1464 = vmatprep.subr.bf16.mxu1 %v2045_v63 }
 0x1a5   :  { %1465 = vmatpush1.bf16.msra.mxu1 %v2043_v0 }
 0x1a6   :  { %1466 = vmatprep.subr.bf16.mxu1 %v2048_v1 }
 0x1a9   :  { %1467 = vmatpush1.bf16.msra.mxu1 %v2046_v2 }
 0x217   :  { %v744_v6 = vpop.f32.mrb[0].mxu1 }
 0x218   :  { %v745_v7 = vadd.f32 %v744_v6, %v2451_v4  ;;  %v746_v8 = vpop.f32.mrb[1].mxu1 }
 0x219   :  { %v747_v9 = vadd.f32 %v746_v8, %v2454_v5  ;;  %v748_v10 = vpop.f32.mrb[2].mxu1 }
 0x21a   :  { %v749_v11 = vadd.f32 %v748_v10, %v2451_v4  ;;  %v750_v12 = vpop.f32.mrb[3].mxu1  ;;  %v823_v14 = vmax.f32 %v745_v7, 0.0 }
 0x21b   :  { %v751_v13 = vadd.f32 %v750_v12, %v2454_v5  ;;  %v824_v16 = vmax.f32 %v747_v9, 0.0 }
 0x21c   :  { %v825_v15 = vmax.f32 %v749_v11, 0.0 }
 0x21d   :  { %v826_v17 = vmax.f32 %v751_v13, 0.0 }
 0x21e   :  { %v855_v18 = vpack.c.bf16 %v825_v15, %v823_v14 }
 0x21f   :  { %v856_v19 = vpack.c.bf16 %v826_v17, %v824_v16  ;;  %v754_v20 = vpop.f32.mrb[4].mxu1 }
 0x220   :  { %v755_v21 = vadd.f32 %v754_v20, %v2451_v4  ;;  %v756_v22 = vpop.f32.mrb[5].mxu1 }
 0x221   :  { %v757_v23 = vadd.f32 %v756_v22, %v2454_v5  ;;  %v758_v24 = vpop.f32.mrb[6].mxu1  ;;  %1107 = vmatprep.mubr.bf16.mxu0 %v856_v19 }
 0x222   :  { %v759_v25 = vadd.f32 %v758_v24, %v2451_v4  ;;  %v760_v26 = vpop.f32.mrb[7].mxu1  ;;  %1108 = vmatmul.mubr.bf16.vlgmr.msra.gmra.mrb[32].mxu0 %v855_v18  ;;  %v827_v28 = vmax.f32 %v755_v21, 0.0 }
 0x223   :  { %v761_v27 = vadd.f32 %v760_v26, %v2454_v5  ;;  %v828_v30 = vmax.f32 %v757_v23, 0.0 }
 0x224   :  { %v829_v29 = vmax.f32 %v759_v25, 0.0 }
 0x225   :  { %v830_v31 = vmax.f32 %v761_v27, 0.0 }
 0x226   :  { %v857_v32 = vpack.c.bf16 %v829_v29, %v827_v28 }
 0x227   :  { %v858_v33 = vpack.c.bf16 %v830_v31, %v828_v30  ;;  %v764_v34 = vpop.f32.mrb[8].mxu1 }
 0x228   :  { %v765_v35 = vadd.f32 %v764_v34, %v2451_v4  ;;  %v766_v41 = vpop.f32.mrb[9].mxu1 }
 0x229   :  { %v767_v37 = vadd.f32 %v766_v41, %v2454_v5  ;;  %v768_v39 = vpop.f32.mrb[10].mxu1  ;;  %1117 = vmatprep.mubr.bf16.mxu0 %v858_v33 }
 0x22a   :  { %v769_v42 = vadd.f32 %v768_v39, %v2451_v4  ;;  %v770_v43 = vpop.f32.mrb[11].mxu1  ;;  %1118 = vmatmul.mubr.bf16.gmra.mrb[36].mxu0 %v857_v32  ;;  %v831_v45 = vmax.f32 %v765_v35, 0.0 }
 0x22b   :  { %v771_v44 = vadd.f32 %v770_v43, %v2454_v5  ;;  %v832_v47 = vmax.f32 %v767_v37, 0.0 }
 0x22c   :  { %v833_v46 = vmax.f32 %v769_v42, 0.0 }
 0x22d   :  { %v834_v48 = vmax.f32 %v771_v44, 0.0 }
 0x22e   :  { %v859_v49 = vpack.c.bf16 %v833_v46, %v831_v45 }
 0x22f   :  { %v860_v50 = vpack.c.bf16 %v834_v48, %v832_v47  ;;  %v774_v51 = vpop.f32.mrb[12].mxu1 }
 0x230   :  { %v775_v52 = vadd.f32 %v774_v51, %v2451_v4  ;;  %v776_v53 = vpop.f32.mrb[13].mxu1 }
 0x231   :  { %v777_v54 = vadd.f32 %v776_v53, %v2454_v5  ;;  %v778_v55 = vpop.f32.mrb[14].mxu1  ;;  %1127 = vmatprep.mubr.bf16.mxu0 %v860_v50 }
 0x232   :  { %v779_v56 = vadd.f32 %v778_v55, %v2451_v4  ;;  %v780_v57 = vpop.f32.mrb[15].mxu1  ;;  %1128 = vmatmul.mubr.bf16.gmra.mrb[40].mxu0 %v859_v49  ;;  %v835_v59 = vmax.f32 %v775_v52, 0.0 }
 0x233   :  { %v781_v58 = vadd.f32 %v780_v57, %v2454_v5  ;;  %v836_v61 = vmax.f32 %v777_v54, 0.0 }
 0x234   :  { %v837_v60 = vmax.f32 %v779_v56, 0.0 }
 0x235   :  { %v838_v62 = vmax.f32 %v781_v58, 0.0 }
 0x236   :  { %v861_v63 = vpack.c.bf16 %v837_v60, %v835_v59 }
 0x237   :  { %v862_v0 = vpack.c.bf16 %v838_v62, %v836_v61  ;;  %v784_v1 = vpop.f32.mrb[16].mxu1  ;;  %v2051_v62 = vld [vmem:[#allocation8 + $0xe4] ss:$8 sps:$4 sm:$0xff]  }
 0x238   :  { %v785_v2 = vadd.f32 %v784_v1, %v2451_v4  ;;  %v786_v3 = vpop.f32.mrb[17].mxu1  ;;  %1468 = vmatprep.subr.bf16.mxu1 %v2051_v62  ;;  %v2052_v1 = vld [vmem:[#allocation8 + $0xf0] ss:$8 sps:$4 sm:$0xff]  }
 0x239   :  { %v787_v6 = vadd.f32 %v786_v3, %v2454_v5  ;;  %v788_v7 = vpop.f32.mrb[18].mxu1  ;;  %1137 = vmatprep.mubr.bf16.mxu0 %v862_v0  ;;  %v2054_v0 = vld [vmem:[#allocation8 + $0xf4] ss:$8 sps:$4 sm:$0xff]  }
 0x23a   :  { %v789_v8 = vadd.f32 %v788_v7, %v2451_v4  ;;  %v790_v9 = vpop.f32.mrb[19].mxu1  ;;  %1138 = vmatmul.mubr.bf16.gmra.mrb[44].mxu0 %v861_v63  ;;  %v839_v11 = vmax.f32 %v785_v2, 0.0  ;;  %v2049_v63 = vld [vmem:[#allocation8 + $0xe0] ss:$8 sps:$4 sm:$0xff]  }
 0x23b   :  { %v791_v10 = vadd.f32 %v790_v9, %v2454_v5  ;;  %v840_v13 = vmax.f32 %v787_v6, 0.0  ;;  %1469 = vmatpush1.bf16.msra.mxu1 %v2049_v63 }
 0x23c   :  { %v841_v12 = vmax.f32 %v789_v8, 0.0  ;;  %1470 = vmatprep.subr.bf16.mxu1 %v2054_v0 }
 0x23d   :  { %v842_v14 = vmax.f32 %v791_v10, 0.0 }
 0x23e   :  { %v863_v15 = vpack.c.bf16 %v841_v12, %v839_v11 }
 0x23f   :  { %v864_v16 = vpack.c.bf16 %v842_v14, %v840_v13  ;;  %v794_v17 = vpop.f32.mrb[20].mxu1  ;;  %1471 = vmatpush1.bf16.msra.mxu1 %v2052_v1 }
 0x240   :  { %v795_v18 = vadd.f32 %v794_v17, %v2451_v4  ;;  %v796_v19 = vpop.f32.mrb[21].mxu1 }
 0x241   :  { %v797_v20 = vadd.f32 %v796_v19, %v2454_v5  ;;  %v798_v21 = vpop.f32.mrb[22].mxu1  ;;  %1147 = vmatprep.mubr.bf16.mxu0 %v864_v16 }
 0x242   :  { %v799_v22 = vadd.f32 %v798_v21, %v2451_v4  ;;  %v800_v23 = vpop.f32.mrb[23].mxu1  ;;  %1148 = vmatmul.mubr.bf16.gmra.mrb[48].mxu0 %v863_v15  ;;  %v843_v25 = vmax.f32 %v795_v18, 0.0 }
 0x243   :  { %v801_v24 = vadd.f32 %v800_v23, %v2454_v5  ;;  %v844_v27 = vmax.f32 %v797_v20, 0.0 }
 0x244   :  { %v845_v26 = vmax.f32 %v799_v22, 0.0 }
 0x245   :  { %v846_v28 = vmax.f32 %v801_v24, 0.0 }
 0x246   :  { %v865_v29 = vpack.c.bf16 %v845_v26, %v843_v25 }
 0x247   :  { %v866_v30 = vpack.c.bf16 %v846_v28, %v844_v27  ;;  %v804_v31 = vpop.f32.mrb[24].mxu1 }
 0x248   :  { %v805_v32 = vadd.f32 %v804_v31, %v2451_v4  ;;  %v806_v33 = vpop.f32.mrb[25].mxu1 }
 0x249   :  { %v807_v34 = vadd.f32 %v806_v33, %v2454_v5  ;;  %v808_v35 = vpop.f32.mrb[26].mxu1  ;;  %1157 = vmatprep.mubr.bf16.mxu0 %v866_v30 }
 0x24a   :  { %v809_v41 = vadd.f32 %v808_v35, %v2451_v4  ;;  %v810_v37 = vpop.f32.mrb[27].mxu1  ;;  %1158 = vmatmul.mubr.bf16.gmra.mrb[52].mxu0 %v865_v29  ;;  %v847_v42 = vmax.f32 %v805_v32, 0.0 }
 0x24b   :  { %v811_v39 = vadd.f32 %v810_v37, %v2454_v5  ;;  %v848_v44 = vmax.f32 %v807_v34, 0.0 }
 0x24c   :  { %v849_v43 = vmax.f32 %v809_v41, 0.0 }
 0x24d   :  { %v850_v45 = vmax.f32 %v811_v39, 0.0 }
 0x24e   :  { %v867_v46 = vpack.c.bf16 %v849_v43, %v847_v42 }
 0x24f   :  { %v868_v47 = vpack.c.bf16 %v850_v45, %v848_v44  ;;  %v814_v48 = vpop.f32.mrb[28].mxu1 }
 0x250   :  { %v815_v49 = vadd.f32 %v814_v48, %v2451_v4  ;;  %v816_v50 = vpop.f32.mrb[29].mxu1 }
 0x251   :  { %v817_v51 = vadd.f32 %v816_v50, %v2454_v5  ;;  %v818_v52 = vpop.f32.mrb[30].mxu1  ;;  %1167 = vmatprep.mubr.bf16.mxu0 %v868_v47 }
 0x252   :  { %v819_v53 = vadd.f32 %v818_v52, %v2451_v4  ;;  %v820_v54 = vpop.f32.mrb[31].mxu1  ;;  %1168 = vmatmul.mubr.bf16.gmra.mrb[56].mxu0 %v867_v46  ;;  %v851_v56 = vmax.f32 %v815_v49, 0.0  ;;  %v903_v4 = vld [vmem:[%s2605_s6] sm:$0x3] }
 0x253   :  { %v821_v55 = vadd.f32 %v820_v54, %v2454_v5  ;;  %v852_v58 = vmax.f32 %v817_v51, 0.0  ;;  %v2492_v5 = vrot.slane %v903_v4, %v2401_v38  ;;  %v2495_v2 = vrot.slane %v903_v4, %v2407_v40 }
 0x254   :  { %v853_v57 = vmax.f32 %v819_v53, 0.0 }
 0x255   :  { %v854_v59 = vmax.f32 %v821_v55, 0.0 }
 0x256   :  { %v869_v60 = vpack.c.bf16 %v853_v57, %v851_v56 }
 0x257   :  { %v870_v61 = vpack.c.bf16 %v854_v59, %v852_v58 }
 0x259   :  { %1177 = vmatprep.mubr.bf16.mxu0 %v870_v61 }
 0x25a   :  { %1178 = vmatmul.mubr.bf16.gmra.mrb[60].mxu0 %v869_v60 }
 0x2f5   :  { %v1109_v3 = vpop.f32.mrb[32].mxu0 }
 0x2f6   :  { %v1110_v6 = vadd.f32 %v1109_v3, %v2492_v5  ;;  %v1111_v7 = vpop.f32.mrb[33].mxu0 }
 0x2f7   :  { %v1112_v8 = vadd.f32 %v1111_v7, %v2495_v2  ;;  %v1113_v9 = vpop.f32.mrb[34].mxu0 }
 0x2f8   :  { %v1114_v10 = vadd.f32 %v1113_v9, %v2492_v5  ;;  %v1115_v11 = vpop.f32.mrb[35].mxu0  ;;  %v1188_v13 = vmax.f32 %v1110_v6, 0.0 }
 0x2f9   :  { %v1116_v12 = vadd.f32 %v1115_v11, %v2495_v2  ;;  %v1189_v15 = vmax.f32 %v1112_v8, 0.0 }
 0x2fa   :  { %v1190_v14 = vmax.f32 %v1114_v10, 0.0 }
 0x2fb   :  { %v1191_v16 = vmax.f32 %v1116_v12, 0.0 }
 0x2fc   :  { %v1220_v17 = vpack.c.bf16 %v1190_v14, %v1188_v13 }
 0x2fd   :  { %v1221_v18 = vpack.c.bf16 %v1191_v16, %v1189_v15  ;;  %v1119_v19 = vpop.f32.mrb[36].mxu0 }
 0x2fe   :  { %v1120_v20 = vadd.f32 %v1119_v19, %v2492_v5  ;;  %v1121_v21 = vpop.f32.mrb[37].mxu0 }
 0x2ff   :  { %v1122_v22 = vadd.f32 %v1121_v21, %v2495_v2  ;;  %v1123_v23 = vpop.f32.mrb[38].mxu0  ;;  %1472 = vmatprep.mubr.bf16.mxu1 %v1221_v18 }
 0x300   :  { %v1124_v24 = vadd.f32 %v1123_v23, %v2492_v5  ;;  %v1125_v25 = vpop.f32.mrb[39].mxu0  ;;  %1473 = vmatmul.mubr.bf16.vlgmr.msra.gmra.mrb[32].mxu1 %v1220_v17  ;;  %v1192_v27 = vmax.f32 %v1120_v20, 0.0 }
 0x301   :  { %v1126_v26 = vadd.f32 %v1125_v25, %v2495_v2  ;;  %v1193_v29 = vmax.f32 %v1122_v22, 0.0 }
 0x302   :  { %v1194_v28 = vmax.f32 %v1124_v24, 0.0 }
 0x303   :  { %v1195_v30 = vmax.f32 %v1126_v26, 0.0 }
 0x304   :  { %v1222_v31 = vpack.c.bf16 %v1194_v28, %v1192_v27 }
 0x305   :  { %v1223_v32 = vpack.c.bf16 %v1195_v30, %v1193_v29  ;;  %v1129_v33 = vpop.f32.mrb[40].mxu0 }
 0x306   :  { %v1130_v34 = vadd.f32 %v1129_v33, %v2492_v5  ;;  %v1131_v35 = vpop.f32.mrb[41].mxu0 }
 0x307   :  { %v1132_v41 = vadd.f32 %v1131_v35, %v2495_v2  ;;  %v1133_v37 = vpop.f32.mrb[42].mxu0  ;;  %1482 = vmatprep.mubr.bf16.mxu1 %v1223_v32 }
 0x308   :  { %v1134_v39 = vadd.f32 %v1133_v37, %v2492_v5  ;;  %v1135_v42 = vpop.f32.mrb[43].mxu0  ;;  %1483 = vmatmul.mubr.bf16.gmra.mrb[36].mxu1 %v1222_v31  ;;  %v1196_v44 = vmax.f32 %v1130_v34, 0.0 }
 0x309   :  { %v1136_v43 = vadd.f32 %v1135_v42, %v2495_v2  ;;  %v1197_v46 = vmax.f32 %v1132_v41, 0.0 }
 0x30a   :  { %v1198_v45 = vmax.f32 %v1134_v39, 0.0 }
 0x30b   :  { %v1199_v47 = vmax.f32 %v1136_v43, 0.0 }
 0x30c   :  { %v1224_v48 = vpack.c.bf16 %v1198_v45, %v1196_v44 }
 0x30d   :  { %v1225_v49 = vpack.c.bf16 %v1199_v47, %v1197_v46  ;;  %v1139_v50 = vpop.f32.mrb[44].mxu0 }
 0x30e   :  { %v1140_v51 = vadd.f32 %v1139_v50, %v2492_v5  ;;  %v1141_v52 = vpop.f32.mrb[45].mxu0 }
 0x30f   :  { %v1142_v53 = vadd.f32 %v1141_v52, %v2495_v2  ;;  %v1143_v54 = vpop.f32.mrb[46].mxu0  ;;  %1492 = vmatprep.mubr.bf16.mxu1 %v1225_v49 }
 0x310   :  { %v1144_v55 = vadd.f32 %v1143_v54, %v2492_v5  ;;  %v1145_v56 = vpop.f32.mrb[47].mxu0  ;;  %1493 = vmatmul.mubr.bf16.gmra.mrb[40].mxu1 %v1224_v48  ;;  %v1200_v58 = vmax.f32 %v1140_v51, 0.0 }
 0x311   :  { %v1146_v57 = vadd.f32 %v1145_v56, %v2495_v2  ;;  %v1201_v60 = vmax.f32 %v1142_v53, 0.0 }
 0x312   :  { %v1202_v59 = vmax.f32 %v1144_v55, 0.0 }
 0x313   :  { %v1203_v61 = vmax.f32 %v1146_v57, 0.0 }
 0x314   :  { %v1226_v62 = vpack.c.bf16 %v1202_v59, %v1200_v58 }
 0x315   :  { %v1227_v63 = vpack.c.bf16 %v1203_v61, %v1201_v60  ;;  %v1149_v0 = vpop.f32.mrb[48].mxu0  ;;  %v2158_v61 = vmov 1966171168  }
 0x316   :  { %v1150_v1 = vadd.f32 %v1149_v0, %v2492_v5  ;;  %v1151_v4 = vpop.f32.mrb[49].mxu0 }
 0x317   :  { %v1152_v3 = vadd.f32 %v1151_v4, %v2495_v2  ;;  %v1153_v6 = vpop.f32.mrb[50].mxu0  ;;  %1502 = vmatprep.mubr.bf16.mxu1 %v1227_v63  ;;  %v2532_v63 = vld.sshfl [vmem:[%s2608_s9] sm:$0x11 pattern:$0x75316420] }
 0x318   :  { %v1154_v7 = vadd.f32 %v1153_v6, %v2492_v5  ;;  %v1155_v8 = vpop.f32.mrb[51].mxu0  ;;  %1503 = vmatmul.mubr.bf16.gmra.mrb[44].mxu1 %v1226_v62  ;;  %v1204_v10 = vmax.f32 %v1150_v1, 0.0  ;;  %v1622_v62 = vunpack.c.l.s4 %v2158_v61  ;;  %v1620_v0 = vcombine.high %v2532_v63, %v2532_v63 }
 0x319   :  { %v1156_v9 = vadd.f32 %v1155_v8, %v2495_v2  ;;  %v1205_v12 = vmax.f32 %v1152_v3, 0.0  ;;  %v1602_v3 = vld [vmem:[#allocation2] sm:$0x1]  ;;  %v2159_v6 = vmov 0  }
 0x31a   :  { %v1206_v11 = vmax.f32 %v1154_v7, 0.0  ;;  %1853 = vset.pattern.permute.xlu0 %v2159_v6  ;;  %v1268_v7 = vld [vmem:[%s2607_s8] sm:$0x3]  ;;  %s2160_s8 = smov [#allocation9]  }
 0x31b   :  { %v1207_v13 = vmax.f32 %v1156_v9, 0.0  ;;  %1605 = vperm.xlu0 %1853, %v1602_v3   ;;  %v2546_v8 = vrot.slane %v1268_v7, %v2401_v38  ;;  %s1690_s20 = sshll.u32 %s2160_s8, 4  ;;  %s1691_s20 = int_to_ptr.vmem [resolvable:$true] %s1690_s20 }
 0x31c   :  { %v1228_v14 = vpack.c.bf16 %v1206_v11, %v1204_v10  ;;  %s2125_s25 = scalar_lea.vmem %s1691_s20, 16  ;;  %s2129_s26 = scalar_lea.vmem %s1691_s20, 32 }
 0x31d   :  { %v1229_v15 = vpack.c.bf16 %v1207_v13, %v1205_v12  ;;  %v1159_v16 = vpop.f32.mrb[52].mxu0  ;;  %p2126_p10 = scmp.ne.s32.totalorder %s1691_s20, %s2125_s25  ;;  %p2130_p11 = scmp.lt.s32.totalorder %s1691_s20, %s1691_s20 }
 0x31e   :  { %v1160_v17 = vadd.f32 %v1159_v16, %v2492_v5  ;;  %v1161_v18 = vpop.f32.mrb[53].mxu0  ;;  %p2131_p12 = scmp.lt.s32.totalorder %s2129_s26, %s2125_s25 }
 0x31f   :  { %v1162_v19 = vadd.f32 %v1161_v18, %v2495_v2  ;;  %v1163_v20 = vpop.f32.mrb[54].mxu0  ;;  %1512 = vmatprep.mubr.bf16.mxu1 %v1229_v15 }
 0x320   :  { %v1164_v21 = vadd.f32 %v1163_v20, %v2492_v5  ;;  %v1165_v22 = vpop.f32.mrb[55].mxu0  ;;  %1513 = vmatmul.mubr.bf16.gmra.mrb[48].mxu1 %v1228_v14  ;;  %v1208_v24 = vmax.f32 %v1160_v17, 0.0  ;;  %p2132_p13 = por %p2131_p12, %p2130_p11 }
 0x321   :  { %v1166_v23 = vadd.f32 %v1165_v22, %v2495_v2  ;;  %v1209_v26 = vmax.f32 %v1162_v19, 0.0 }
 0x322   :  { %v1210_v25 = vmax.f32 %v1164_v21, 0.0  ;;  %p2133_p0 = pnand %p2132_p13, %p2126_p10 }
 0x323   :  { %v1211_v27 = vmax.f32 %v1166_v23, 0.0 }
 0x324   :  { %v1230_v28 = vpack.c.bf16 %v1210_v25, %v1208_v24 }
 0x325   :  { %v1231_v29 = vpack.c.bf16 %v1211_v27, %v1209_v26  ;;  %v1169_v30 = vpop.f32.mrb[56].mxu0 }
 0x326   :  { %v1170_v31 = vadd.f32 %v1169_v30, %v2492_v5  ;;  %v1171_v32 = vpop.f32.mrb[57].mxu0 }
 0x327   :  { %v1172_v33 = vadd.f32 %v1171_v32, %v2495_v2  ;;  %v1173_v34 = vpop.f32.mrb[58].mxu0  ;;  %1522 = vmatprep.mubr.bf16.mxu1 %v1231_v29 }
 0x328   :  { %v1174_v35 = vadd.f32 %v1173_v34, %v2492_v5  ;;  %v1175_v41 = vpop.f32.mrb[59].mxu0  ;;  %1523 = vmatmul.mubr.bf16.gmra.mrb[52].mxu1 %v1230_v28  ;;  %v1212_v39 = vmax.f32 %v1170_v31, 0.0 }
 0x329   :  { %v1176_v37 = vadd.f32 %v1175_v41, %v2495_v2  ;;  %v1213_v43 = vmax.f32 %v1172_v33, 0.0 }
 0x32a   :  { %v1214_v42 = vmax.f32 %v1174_v35, 0.0 }
 0x32b   :  { %v1215_v44 = vmax.f32 %v1176_v37, 0.0 }
 0x32c   :  { %v1232_v45 = vpack.c.bf16 %v1214_v42, %v1212_v39 }
 0x32d   :  { %v1233_v46 = vpack.c.bf16 %v1215_v44, %v1213_v43  ;;  %v1179_v47 = vpop.f32.mrb[60].mxu0 }
 0x32e   :  { %v1180_v48 = vadd.f32 %v1179_v47, %v2492_v5  ;;  %v1181_v49 = vpop.f32.mrb[61].mxu0 }
 0x32f   :  { %v1182_v50 = vadd.f32 %v1181_v49, %v2495_v2  ;;  %v1183_v51 = vpop.f32.mrb[62].mxu0  ;;  %1532 = vmatprep.mubr.bf16.mxu1 %v1233_v46 }
 0x330   :  { %v1184_v52 = vadd.f32 %v1183_v51, %v2492_v5  ;;  %v1185_v53 = vpop.f32.mrb[63].mxu0  ;;  %1533 = vmatmul.mubr.bf16.gmra.mrb[56].mxu1 %v1232_v45  ;;  %v1216_v55 = vmax.f32 %v1180_v48, 0.0  ;;  %v1623_v5 = vunpack.c.0.s8 %v1622_v62 }
 0x331   :  { %v1186_v54 = vadd.f32 %v1185_v53, %v2495_v2  ;;  %v1217_v57 = vmax.f32 %v1182_v50, 0.0 }
 0x332   :  { %v1218_v56 = vmax.f32 %v1184_v52, 0.0  ;;  %v2537_v2 = vsub.s32 %v1623_v5, %v2398_v36  ;;  %v2549_v36 = vrot.slane %v1268_v7, %v2407_v40 }
 0x333   :  { %v1219_v58 = vmax.f32 %v1186_v54, 0.0 }
 0x334   :  { %v1234_v59 = vpack.c.bf16 %v1218_v56, %v1216_v55  ;;  %v1627_v1 = vrot.slane %v2532_v63, %v2537_v2  ;;  %v1634_v4 = vrot.slane %v1620_v0, %v2537_v2 }
 0x335   :  { %v1235_v60 = vpack.c.bf16 %v1219_v58, %v1217_v57 }
 0x336   :  { %1669 = vmatprep.mubr.bf16.mxu0 %v1634_v4 }
 0x337   :  { %1542 = vmatprep.mubr.bf16.mxu1 %v1235_v60 }
 0x338   :  { %1543 = vmatmul.mubr.bf16.gmra.mrb[60].mxu1 %v1234_v59 }
 0x3d3   :  { %v1474_v9 = vpop.f32.mrb[32].mxu1 }
 0x3d4   :  { %v1475_v10 = vadd.f32 %v1474_v9, %v2546_v8  ;;  %v1476_v11 = vpop.f32.mrb[33].mxu1 }
 0x3d5   :  { %v1477_v12 = vadd.f32 %v1476_v11, %v2549_v36  ;;  %v1478_v13 = vpop.f32.mrb[34].mxu1 }
 0x3d6   :  { %v1479_v14 = vadd.f32 %v1478_v13, %v2546_v8  ;;  %v1480_v15 = vpop.f32.mrb[35].mxu1  ;;  %v1553_v17 = vmax.f32 %v1475_v10, 0.0 }
 0x3d7   :  { %v1481_v16 = vadd.f32 %v1480_v15, %v2549_v36  ;;  %v1554_v19 = vmax.f32 %v1477_v12, 0.0 }
 0x3d8   :  { %v1555_v18 = vmax.f32 %v1479_v14, 0.0 }
 0x3d9   :  { %v1556_v20 = vmax.f32 %v1481_v16, 0.0 }
 0x3da   :  { %v1586_v21 = vpack.c.bf16 %v1555_v18, %v1553_v17 }
 0x3db   :  { %v1587_v22 = vpack.c.bf16 %v1556_v20, %v1554_v19  ;;  %v1484_v40 = vpop.f32.mrb[36].mxu1 }
 0x3dc   :  { %v1485_v23 = vadd.f32 %v1484_v40, %v2546_v8  ;;  %v1486_v24 = vpop.f32.mrb[37].mxu1 }
 0x3dd   :  { %v1487_v25 = vadd.f32 %v1486_v24, %v2549_v36  ;;  %v1488_v26 = vpop.f32.mrb[38].mxu1  ;;  %1637 = vmatprep.subr.bf16.mxu0 %v1587_v22 }
 0x3de   :  { %v1489_v27 = vadd.f32 %v1488_v26, %v2546_v8  ;;  %v1490_v28 = vpop.f32.mrb[39].mxu1  ;;  %1638 = vmatpush1.bf16.xpose.msra.mxu0 %v1586_v21  ;;  %v1557_v30 = vmax.f32 %v1485_v23, 0.0 }
 0x3df   :  { %v1491_v29 = vadd.f32 %v1490_v28, %v2549_v36  ;;  %v1558_v32 = vmax.f32 %v1487_v25, 0.0 }
 0x3e0   :  { %v1559_v31 = vmax.f32 %v1489_v27, 0.0 }
 0x3e1   :  { %v1560_v33 = vmax.f32 %v1491_v29, 0.0 }
 0x3e2   :  { %v1588_v34 = vpack.c.bf16 %v1559_v31, %v1557_v30 }
 0x3e3   :  { %v1589_v35 = vpack.c.bf16 %v1560_v33, %v1558_v32  ;;  %v1494_v41 = vpop.f32.mrb[40].mxu1 }
 0x3e4   :  { %v1495_v37 = vadd.f32 %v1494_v41, %v2546_v8  ;;  %v1496_v39 = vpop.f32.mrb[41].mxu1 }
 0x3e5   :  { %v1497_v42 = vadd.f32 %v1496_v39, %v2549_v36  ;;  %v1498_v43 = vpop.f32.mrb[42].mxu1  ;;  %1639 = vmatprep.subr.bf16.mxu0 %v1589_v35 }
 0x3e6   :  { %v1499_v44 = vadd.f32 %v1498_v43, %v2546_v8  ;;  %v1500_v45 = vpop.f32.mrb[43].mxu1  ;;  %1640 = vmatpush1.bf16.xpose.msra.mxu0 %v1588_v34  ;;  %v1561_v47 = vmax.f32 %v1495_v37, 0.0 }
 0x3e7   :  { %v1501_v46 = vadd.f32 %v1500_v45, %v2549_v36  ;;  %v1562_v49 = vmax.f32 %v1497_v42, 0.0 }
 0x3e8   :  { %v1563_v48 = vmax.f32 %v1499_v44, 0.0 }
 0x3e9   :  { %v1564_v50 = vmax.f32 %v1501_v46, 0.0 }
 0x3ea   :  { %v1590_v51 = vpack.c.bf16 %v1563_v48, %v1561_v47 }
 0x3eb   :  { %v1591_v52 = vpack.c.bf16 %v1564_v50, %v1562_v49  ;;  %v1504_v53 = vpop.f32.mrb[44].mxu1 }
 0x3ec   :  { %v1505_v54 = vadd.f32 %v1504_v53, %v2546_v8  ;;  %v1506_v55 = vpop.f32.mrb[45].mxu1 }
 0x3ed   :  { %v1507_v56 = vadd.f32 %v1506_v55, %v2549_v36  ;;  %v1508_v57 = vpop.f32.mrb[46].mxu1  ;;  %1641 = vmatprep.subr.bf16.mxu0 %v1591_v52 }
 0x3ee   :  { %v1509_v58 = vadd.f32 %v1508_v57, %v2546_v8  ;;  %v1510_v59 = vpop.f32.mrb[47].mxu1  ;;  %1642 = vmatpush1.bf16.xpose.msra.mxu0 %v1590_v51  ;;  %v1565_v61 = vmax.f32 %v1505_v54, 0.0 }
 0x3ef   :  { %v1511_v60 = vadd.f32 %v1510_v59, %v2549_v36  ;;  %v1566_v5 = vmax.f32 %v1507_v56, 0.0 }
 0x3f0   :  { %v1567_v62 = vmax.f32 %v1509_v58, 0.0 }
 0x3f1   :  { %v1568_v0 = vmax.f32 %v1511_v60, 0.0 }
 0x3f2   :  { %v1592_v4 = vpack.c.bf16 %v1567_v62, %v1565_v61 }
 0x3f3   :  { %v1593_v3 = vpack.c.bf16 %v1568_v0, %v1566_v5  ;;  %v1514_v6 = vpop.f32.mrb[48].mxu1 }
 0x3f4   :  { %v1515_v7 = vadd.f32 %v1514_v6, %v2546_v8  ;;  %v1516_v9 = vpop.f32.mrb[49].mxu1 }
 0x3f5   :  { %v1517_v10 = vadd.f32 %v1516_v9, %v2549_v36  ;;  %v1518_v11 = vpop.f32.mrb[50].mxu1  ;;  %1643 = vmatprep.subr.bf16.mxu0 %v1593_v3 }
 0x3f6   :  { %v1519_v12 = vadd.f32 %v1518_v11, %v2546_v8  ;;  %v1520_v13 = vpop.f32.mrb[51].mxu1  ;;  %1644 = vmatpush1.bf16.xpose.msra.mxu0 %v1592_v4  ;;  %v1569_v15 = vmax.f32 %v1515_v7, 0.0  ;;  %v1606_v4 = vpop.permute.xlu0 %1605 }
 0x3f7   :  { %v1521_v14 = vadd.f32 %v1520_v13, %v2549_v36  ;;  %v1570_v17 = vmax.f32 %v1517_v10, 0.0  ;;  %v1611_v3 = vrot.slane %v1606_v4, %v2401_v38 }
 0x3f8   :  { %v1571_v16 = vmax.f32 %v1519_v12, 0.0 }
 0x3f9   :  { %v1572_v18 = vmax.f32 %v1521_v14, 0.0 }
 0x3fa   :  { %v1594_v19 = vpack.c.bf16 %v1571_v16, %v1569_v15 }
 0x3fb   :  { %v1595_v20 = vpack.c.bf16 %v1572_v18, %v1570_v17  ;;  %v1524_v21 = vpop.f32.mrb[52].mxu1 }
 0x3fc   :  { %v1525_v22 = vadd.f32 %v1524_v21, %v2546_v8  ;;  %v1526_v40 = vpop.f32.mrb[53].mxu1 }
 0x3fd   :  { %v1527_v23 = vadd.f32 %v1526_v40, %v2549_v36  ;;  %v1528_v24 = vpop.f32.mrb[54].mxu1  ;;  %1645 = vmatprep.subr.bf16.mxu0 %v1595_v20 }
 0x3fe   :  { %v1529_v25 = vadd.f32 %v1528_v24, %v2546_v8  ;;  %v1530_v26 = vpop.f32.mrb[55].mxu1  ;;  %1646 = vmatpush1.bf16.xpose.msra.mxu0 %v1594_v19  ;;  %v1573_v28 = vmax.f32 %v1525_v22, 0.0 }
 0x3ff   :  { %v1531_v27 = vadd.f32 %v1530_v26, %v2549_v36  ;;  %v1574_v30 = vmax.f32 %v1527_v23, 0.0 }
 0x400   :  { %v1575_v29 = vmax.f32 %v1529_v25, 0.0 }
 0x401   :  { %v1576_v31 = vmax.f32 %v1531_v27, 0.0 }
 0x402   :  { %v1596_v32 = vpack.c.bf16 %v1575_v29, %v1573_v28 }
 0x403   :  { %v1597_v33 = vpack.c.bf16 %v1576_v31, %v1574_v30  ;;  %v1534_v34 = vpop.f32.mrb[56].mxu1 }
 0x404   :  { %v1535_v35 = vadd.f32 %v1534_v34, %v2546_v8  ;;  %v1536_v41 = vpop.f32.mrb[57].mxu1 }
 0x405   :  { %v1537_v37 = vadd.f32 %v1536_v41, %v2549_v36  ;;  %v1538_v39 = vpop.f32.mrb[58].mxu1  ;;  %1647 = vmatprep.subr.bf16.mxu0 %v1597_v33 }
 0x406   :  { %v1539_v42 = vadd.f32 %v1538_v39, %v2546_v8  ;;  %v1540_v43 = vpop.f32.mrb[59].mxu1  ;;  %1648 = vmatpush1.bf16.xpose.msra.mxu0 %v1596_v32  ;;  %v1577_v45 = vmax.f32 %v1535_v35, 0.0 }
 0x407   :  { %v1541_v44 = vadd.f32 %v1540_v43, %v2549_v36  ;;  %v1578_v47 = vmax.f32 %v1537_v37, 0.0 }
 0x408   :  { %v1579_v46 = vmax.f32 %v1539_v42, 0.0 }
 0x409   :  { %v1580_v48 = vmax.f32 %v1541_v44, 0.0 }
 0x40a   :  { %v1598_v49 = vpack.c.bf16 %v1579_v46, %v1577_v45 }
 0x40b   :  { %v1599_v50 = vpack.c.bf16 %v1580_v48, %v1578_v47  ;;  %v1544_v51 = vpop.f32.mrb[60].mxu1 }
 0x40c   :  { %v1545_v52 = vadd.f32 %v1544_v51, %v2546_v8  ;;  %v1546_v53 = vpop.f32.mrb[61].mxu1 }
 0x40d   :  { %v1547_v54 = vadd.f32 %v1546_v53, %v2549_v36  ;;  %v1548_v55 = vpop.f32.mrb[62].mxu1  ;;  %1649 = vmatprep.subr.bf16.mxu0 %v1599_v50 }
 0x40e   :  { %v1549_v56 = vadd.f32 %v1548_v55, %v2546_v8  ;;  %v1550_v57 = vpop.f32.mrb[63].mxu1  ;;  %1650 = vmatpush1.bf16.xpose.msra.mxu0 %v1598_v49  ;;  %v1581_v59 = vmax.f32 %v1545_v52, 0.0 }
 0x40f   :  { %v1551_v58 = vadd.f32 %v1550_v57, %v2549_v36  ;;  %v1582_v61 = vmax.f32 %v1547_v54, 0.0 }
 0x410   :  { %v1583_v60 = vmax.f32 %v1549_v56, 0.0 }
 0x411   :  { %v1584_v62 = vmax.f32 %v1551_v58, 0.0 }
 0x412   :  { %v1600_v5 = vpack.c.bf16 %v1583_v60, %v1581_v59 }
 0x413   :  { %v1601_v0 = vpack.c.bf16 %v1584_v62, %v1582_v61 }
 0x415   :  { %1651 = vmatprep.subr.bf16.mxu0 %v1601_v0 }
 0x416   :  { %1652 = vmatpush1.bf16.xpose.msra.mxu0 %v1600_v5 }
 0x41d   :  { %1670 = vmatmul.mubr.bf16.vlgmr.msra.gmra.mrb[64].mxu0 %v1627_v1 }
 0x4f0   :  { %v1671_v8 = vpop.f32.mrb[64].mxu0 }
 0x4f1   :  { %v1672_v6 = vadd.f32 %v1671_v8, %v1611_v3  ;;  %v1673_v7 = vpop.f32.mrb[65].mxu0 }
 0x4f2   :  { %v1674_v9 = vpop.f32.mrb[66].mxu0 }
 0x4f3   :  { %v1844_v36 = vmul.f32 -1.442695, %v1672_v6  ;;  %v1675_v10 = vpop.f32.mrb[67].mxu0 }
 0x4f5   :  { %2055 = vpow2.f32 %v1844_v36 }
 0x4ff   :  { %v2056_v11 = vpop.eup %2055 }
 0x500   :  { %v1680_v12 = vadd.f32 1.0, %v2056_v11 }
 0x502   :  { %2057 = vrcp.f32 %v1680_v12 }
 0x50c   :  { %v2058_v13 = vpop.eup %2057 }
 0x50d   :  { %1683 = vst [vmem:[#allocation9] sm:$0x1] %v2058_v13 }
 0x50e   :  { %2136 = shalt.err (!%p2133_p0)
}
 0x50f   :  { %s2137_s28 = scalar_lea.hbm %s2610_s11, 16 }
 0x510   :  { %p2138_p1 = scmp.ne.s32.totalorder %s2610_s11, %s2137_s28  ;;  %p2141_p2 = scmp.lt.u32.totalorder %s2137_s28, %s2610_s11 }
 0x512   :  { %p2143_p3 = pnand %p2141_p2, %p2138_p1 }
 0x514   :  { %2146 = shalt.err (!%p2143_p3)
}
 0x515   :  { %1693 = dma.vmem_to_hbm [thread:$0]  %s1691_s20, 16, %s2610_s11, [#allocation5]  }
 0x516   :  { %2151 = dma.done.wait [#allocation5], 16  }
 0x517   :  { %2152 = vsyncadd [#allocation5], 4294967280 }
 0x518   :  { %1697 = vsyncpa [#allocation4], 1 }
 0x519   :  { %1698 = vsyncpa [#allocation7], 1 }
 0x51a   :  { %1699 = vsyncpa [#allocation5], 1 }

</bundles_post_ra>
